<compile_context>
chip_gen: v6e
topology: v6e:2x2x1
jax: 0.10.0
libtpu: 0.0.40
codegen_flags: <defaults>
</compile_context>

<pallas_src>
import functools

import numpy as np
import jax
import jax.numpy as jnp
from jax.experimental import pallas as pl
from jax.experimental.pallas import tpu as pltpu

BN_EPS = 1e-5  # nn.BatchNorm1d default


def _sigmoid(x):
    # explicit form: exp (EUP) + divide lower cleanly inside the kernel
    return 1.0 / (1.0 + jnp.exp(-x))


def _gated_block_kernel(K, dilation, T, C, x_ref, w1_ref, w2_ref, misc_ref, out_ref):
    """One grid step: `block_b` stacked sequences as a time-major [M, C] tile.

    x_ref   : [M, C_in]          M = block_b * T  (time-major rows)
    w1_ref  : [C_in, 2*K*C + C]  per-tap [Wg1[k] || Ws1[k]] blocks, then W_skip
    w2_ref  : [C,    2*K*C]      per-tap [Wg2[k] || Ws2[k]] blocks
    misc_ref: [5, 2*C]  rows: [bg1||bs1], [b_skip||0], [bn1_s||bn1_t],
                              [bg2||bs2], [bn2_s||bn2_t]
    out_ref : [M, C]
    """
    M = x_ref.shape[0]
    misc = misc_ref[...]
    # time index of each row within its own sequence (rows = stacked sequences)
    t_in_seq = jax.lax.broadcasted_iota(jnp.int32, (M, 1), 0) % T

    def causal_accumulate(big, dil):
        # big: [M, >= 2*K*C]; tap k lives in lanes [2*C*k, 2*C*(k+1)).
        acc = jnp.zeros((M, 2 * C), jnp.float32)
        for k in range(K):
            s = dil * (K - 1 - k)            # causal shift of tap k
            if s >= T:                       # tap only ever sees zero padding
                continue
            chunk = big[:, 2 * C * k:2 * C * (k + 1)]
            if s == 0:
                acc = acc + chunk
            else:
                rolled = pltpu.roll(chunk, shift=s, axis=0)   # sublane roll (XLU)
                acc = acc + jnp.where(t_in_seq >= s, rolled, 0.0)
        return acc

    # ---- stage 1: gated causal conv (dilation d) + 1x1 skip, one fused matmul
    x_bf = x_ref[...].astype(jnp.bfloat16)
    big1 = jnp.dot(x_bf, w1_ref[...].astype(jnp.bfloat16),
                   preferred_element_type=jnp.float32)          # [M, 2KC + C]
    gs1 = causal_accumulate(big1, dilation) + misc[0:1, :]       # + [bg1 || bs1]
    skip = big1[:, 2 * K * C:] + misc[1:2, :C]                   # 1x1 skip conv
    h1 = _sigmoid(gs1[:, :C]) * jnp.tanh(gs1[:, C:])
    h1 = h1 * misc[2:3, :C] + misc[2:3, C:]                      # bn1 (folded, eval)

    # ---- stage 2: gated causal conv (dilation 2d), one fused matmul
    big2 = jnp.dot(h1.astype(jnp.bfloat16), w2_ref[...].astype(jnp.bfloat16),
                   preferred_element_type=jnp.float32)           # [M, 2KC]
    gs2 = causal_accumulate(big2, 2 * dilation) + misc[3:4, :]   # + [bg2 || bs2]
    h2 = _sigmoid(gs2[:, :C]) * jnp.tanh(gs2[:, C:])
    h2 = h2 * misc[4:5, :C] + misc[4:5, C:]                      # bn2 (folded, eval)

    out_ref[...] = (h2 + skip).astype(out_ref.dtype)


def gated_res_causal_conv_block(x_ncl, w1_packed, w2_packed, misc, *,
                                kernel_size, dilation, n_out, block_b=8):
    """x_ncl: [B, C_in, L] (PyTorch layout) -> [B, n_out, L]."""
    B, c_in, T = x_ncl.shape
    block_b = max(1, min(block_b, B))
    while B % block_b:               # keep the grid exact
        block_b -= 1
    M = block_b * T

    x_rows = jnp.transpose(x_ncl, (0, 2, 1)).reshape(B * T, c_in)

    out_rows = pl.pallas_call(
        functools.partial(_gated_block_kernel, kernel_size, dilation, T, n_out),
        grid=(B // block_b,),
        in_specs=[
            pl.BlockSpec((M, c_in), lambda i: (i, 0)),
            pl.BlockSpec(w1_packed.shape, lambda i: (0, 0)),
            pl.BlockSpec(w2_packed.shape, lambda i: (0, 0)),
            pl.BlockSpec(misc.shape, lambda i: (0, 0)),
        ],
        out_specs=pl.BlockSpec((M, n_out), lambda i: (i, 0)),
        out_shape=jax.ShapeDtypeStruct((B * T, n_out), jnp.float32),
        compiler_params=pltpu.CompilerParams(
            dimension_semantics=("parallel",)),
    )(x_rows, w1_packed, w2_packed, misc)

    return jnp.transpose(out_rows.reshape(B, T, n_out), (0, 2, 1))


def init_params(key, n_in, n_out, kernel_size):
    """Synthetic parameters matching the PyTorch module's init_weights()."""
    ks = jax.random.split(key, 5)

    def conv_w(k, K, cin, cout):
        # CausalConv1d.init_weights: normal(0, sqrt(2 / (K * out_channels)))
        std = np.sqrt(2.0 / (K * cout))
        return std * jax.random.normal(k, (K, cin, cout), jnp.float32)

    bias = jnp.full((n_out,), 0.1, jnp.float32)          # conv bias fill 0.1
    # eval-mode BatchNorm1d fold: gamma=1, beta=0, running_mean=0, running_var=1
    bn_scale = jnp.full((n_out,), 1.0 / np.sqrt(1.0 + BN_EPS), jnp.float32)
    bn_shift = jnp.zeros((n_out,), jnp.float32)
    return dict(
        wg1=conv_w(ks[0], kernel_size, n_in, n_out), bg1=bias,
        ws1=conv_w(ks[1], kernel_size, n_in, n_out), bs1=bias,
        wg2=conv_w(ks[2], kernel_size, n_out, n_out), bg2=bias,
        ws2=conv_w(ks[3], kernel_size, n_out, n_out), bs2=bias,
        wskip=conv_w(ks[4], 1, n_in, n_out), bskip=bias,
        bn1_scale=bn_scale, bn1_shift=bn_shift,
        bn2_scale=bn_scale, bn2_shift=bn_shift,
    )


def pack_params(p, kernel_size, n_out):
    """Pack weights lane-dense (per tap) and all small vectors into one array."""
    K, C = kernel_size, n_out
    taps1 = [jnp.concatenate([p["wg1"][k], p["ws1"][k]], axis=1) for k in range(K)]
    w1 = jnp.concatenate(taps1 + [p["wskip"][0]], axis=1)        # [C_in, 2KC + C]
    taps2 = [jnp.concatenate([p["wg2"][k], p["ws2"][k]], axis=1) for k in range(K)]
    w2 = jnp.concatenate(taps2, axis=1)                          # [C, 2KC]
    zc = jnp.zeros((C,), jnp.float32)
    misc = jnp.stack([
        jnp.concatenate([p["bg1"], p["bs1"]]),
        jnp.concatenate([p["bskip"], zc]),
        jnp.concatenate([p["bn1_scale"], p["bn1_shift"]]),
        jnp.concatenate([p["bg2"], p["bs2"]]),
        jnp.concatenate([p["bn2_scale"], p["bn2_shift"]]),
    ])                                                           # [5, 2C]
    return w1, w2, misc


def reference_forward(x, p, *, kernel_size, dilation):
    """Plain-JAX f32 reference mirroring the PyTorch NCL code path."""
    def causal(h, w_kio, b, d):
        K = w_kio.shape[0]
        pad = d * (K - 1)
        rhs = jnp.transpose(w_kio, (2, 1, 0))                    # [Cout, Cin, K]
        y = jax.lax.conv_general_dilated(
            h, rhs, window_strides=(1,), padding=[(pad, 0)], rhs_dilation=(d,),
            dimension_numbers=("NCH", "OIH", "NCH"),
            precision=jax.lax.Precision.HIGHEST)
        return y + b[None, :, None]

    aff = lambda v, s, t: v * s[None, :, None] + t[None, :, None]

    skip = causal(x, p["wskip"], p["bskip"], 1)
    g1 = causal(x, p["wg1"], p["bg1"], dilation)
    s1 = causal(x, p["ws1"], p["bs1"], dilation)
    h1 = jax.nn.sigmoid(g1) * jnp.tanh(s1)
    h1 = aff(h1, p["bn1_scale"], p["bn1_shift"])
    g2 = causal(h1, p["wg2"], p["bg2"], 2 * dilation)
    s2 = causal(h1, p["ws2"], p["bs2"], 2 * dilation)
    h2 = jax.nn.sigmoid(g2) * jnp.tanh(s2)
    h2 = aff(h2, p["bn2_scale"], p["bn2_shift"])
    return h2 + skip


if __name__ == "__main__":
    # small shapes: batch=16 sequences, n_in=4 channels, L=16 timesteps,
    # n_out=32 hidden channels, kernel_size=3, dilation=1
    B, n_in, n_out, L = 16, 4, 32, 16
    kernel_size, dilation = 3, 1

    key = jax.random.PRNGKey(0)
    k_in, k_par = jax.random.split(key)
    x = jax.random.normal(k_in, (B, n_in, L), jnp.float32)
    raw = init_params(k_par, n_in, n_out, kernel_size)
    w1, w2, misc = pack_params(raw, kernel_size, n_out)

    out = gated_res_causal_conv_block(
        x, w1, w2, misc, kernel_size=kernel_size, dilation=dilation,
        n_out=n_out, block_b=8)          # block_b * L = 128 rows per grid step
    jax.block_until_ready(out)

    ref = reference_forward(x, raw, kernel_size=kernel_size, dilation=dilation)
    # bf16 MXU inputs (f32 accumulation) vs f32/HIGHEST reference
    np.testing.assert_allclose(np.asarray(out), np.asarray(ref),
                               rtol=2e-2, atol=2e-2)
    print("KERNEL_OK")
</pallas_src>

<mosaic_0001>
module attributes {stable_mosaic.version = 11 : i64} {
  func.func @_gated_block_kernel(%arg0: i32, %arg1: memref<128x4xf32, #tpu.memory_space<vmem>>, %arg2: memref<4x224xf32, #tpu.memory_space<vmem>>, %arg3: memref<32x192xf32, #tpu.memory_space<vmem>>, %arg4: memref<5x64xf32, #tpu.memory_space<vmem>>, %arg5: memref<128x32xf32, #tpu.memory_space<vmem>>) attributes {dimension_semantics = [#tpu.dimension_semantics<parallel>], iteration_bounds = array<i64: 2>, scalar_prefetch = 0 : i64, scratch_operands = 0 : i64, tpu.core_type = #tpu.core_type<tc>, window_params = [{transform_indices = @transform_0, window_bounds = array<i64: 128, 4>}, {pipeline_mode = #tpu.pipeline_mode<synchronous>, transform_indices = @transform_1, window_bounds = array<i64: 4, 224>}, {pipeline_mode = #tpu.pipeline_mode<synchronous>, transform_indices = @transform_2, window_bounds = array<i64: 32, 192>}, {pipeline_mode = #tpu.pipeline_mode<synchronous>, transform_indices = @transform_3, window_bounds = array<i64: 5, 64>}, {transform_indices = @transform_4, window_bounds = array<i64: 128, 32>}]} {
    %c0 = arith.constant 0 : index
    %c0_0 = arith.constant 0 : index
    %0 = vector.load %arg4[%c0, %c0_0] : memref<5x64xf32, #tpu.memory_space<vmem>>, vector<5x64xf32>
    %1 = tpu.iota {dimensions = array<i32: 0>} : vector<128x1xi32>
    %c16_i32 = arith.constant 16 : i32
    %c0_i32 = arith.constant 0 : i32
    %2 = arith.cmpi eq, %c16_i32, %c0_i32 : i32
    %c1_i32 = arith.constant 1 : i32
    %3 = arith.select %2, %c1_i32, %c16_i32 : i32
    %4 = vector.broadcast %3 : i32 to vector<128x1xi32>
    %5 = arith.remsi %1, %4 : vector<128x1xi32>
    %c0_i32_1 = arith.constant 0 : i32
    %6 = vector.broadcast %c0_i32_1 : i32 to vector<128x1xi32>
    %7 = arith.cmpi ne, %5, %6 : vector<128x1xi32>
    %c0_i32_2 = arith.constant 0 : i32
    %8 = vector.broadcast %c0_i32_2 : i32 to vector<128x1xi32>
    %9 = arith.cmpi slt, %5, %8 : vector<128x1xi32>
    %c0_i32_3 = arith.constant 0 : i32
    %10 = arith.cmpi slt, %3, %c0_i32_3 : i32
    %11 = vector.broadcast %10 : i1 to vector<128x1xi1>
    %12 = vector.broadcast %11 : vector<128x1xi1> to vector<128x1xi1>
    %13 = arith.xori %9, %12 : vector<128x1xi1>
    %14 = arith.andi %13, %7 : vector<128x1xi1>
    %15 = vector.broadcast %3 : i32 to vector<128x1xi32>
    %16 = arith.addi %5, %15 : vector<128x1xi32>
    %17 = arith.select %14, %16, %5 : vector<128x1xi1>, vector<128x1xi32>
    %c0_4 = arith.constant 0 : index
    %c0_5 = arith.constant 0 : index
    %18 = vector.load %arg1[%c0_4, %c0_5] : memref<128x4xf32, #tpu.memory_space<vmem>>, vector<128x4xf32>
    %19 = arith.truncf %18 : vector<128x4xf32> to vector<128x4xbf16>
    %c0_6 = arith.constant 0 : index
    %c0_7 = arith.constant 0 : index
    %20 = vector.load %arg2[%c0_6, %c0_7] : memref<4x224xf32, #tpu.memory_space<vmem>>, vector<4x224xf32>
    %21 = arith.truncf %20 : vector<4x224xf32> to vector<4x224xbf16>
    %cst = arith.constant dense<0.000000e+00> : vector<128x224xf32>
    %22 = tpu.matmul %19, %21, %cst {dimension_numbers = #tpu.dot_dimension_numbers<[1], [0], [0], [1], [0, 0, 1, 1], [], []>} : vector<128x4xbf16>, vector<4x224xbf16>, vector<128x224xf32> -> vector<128x224xf32>
    %cst_8 = arith.constant 0.000000e+00 : f32
    %23 = vector.broadcast %cst_8 : f32 to vector<128x64xf32>
    %24 = vector.extract_strided_slice %22 {offsets = [0, 0], sizes = [128, 64], strides = [1, 1]} : vector<128x224xf32> to vector<128x64xf32>
    %c2_i32 = arith.constant 2 : i32
    %25 = tpu.dynamic_rotate %24 by %c2_i32 dim 0 : vector<128x64xf32>, i32 -> vector<128x64xf32>
    %c2_i32_9 = arith.constant 2 : i32
    %26 = vector.broadcast %c2_i32_9 : i32 to vector<128x1xi32>
    %27 = arith.cmpi sge, %17, %26 : vector<128x1xi32>
    %cst_10 = arith.constant 0.000000e+00 : f32
    %28 = vector.shape_cast %27 : vector<128x1xi1> to vector<128x1xi1>
    %29 = vector.broadcast %28 : vector<128x1xi1> to vector<128x64xi1>
    %30 = vector.broadcast %cst_10 : f32 to vector<128x64xf32>
    %31 = arith.select %29, %25, %30 : vector<128x64xi1>, vector<128x64xf32>
    %32 = arith.addf %23, %31 : vector<128x64xf32>
    %33 = vector.extract_strided_slice %22 {offsets = [0, 64], sizes = [128, 64], strides = [1, 1]} : vector<128x224xf32> to vector<128x64xf32>
    %c1_i32_11 = arith.constant 1 : i32
    %34 = tpu.dynamic_rotate %33 by %c1_i32_11 dim 0 : vector<128x64xf32>, i32 -> vector<128x64xf32>
    %c1_i32_12 = arith.constant 1 : i32
    %35 = vector.broadcast %c1_i32_12 : i32 to vector<128x1xi32>
    %36 = arith.cmpi sge, %17, %35 : vector<128x1xi32>
    %cst_13 = arith.constant 0.000000e+00 : f32
    %37 = vector.shape_cast %36 : vector<128x1xi1> to vector<128x1xi1>
    %38 = vector.broadcast %37 : vector<128x1xi1> to vector<128x64xi1>
    %39 = vector.broadcast %cst_13 : f32 to vector<128x64xf32>
    %40 = arith.select %38, %34, %39 : vector<128x64xi1>, vector<128x64xf32>
    %41 = arith.addf %32, %40 : vector<128x64xf32>
    %42 = vector.extract_strided_slice %22 {offsets = [0, 128], sizes = [128, 64], strides = [1, 1]} : vector<128x224xf32> to vector<128x64xf32>
    %43 = arith.addf %41, %42 : vector<128x64xf32>
    %44 = vector.extract_strided_slice %0 {offsets = [0, 0], sizes = [1, 64], strides = [1, 1]} : vector<5x64xf32> to vector<1x64xf32>
    %45 = vector.broadcast %44 : vector<1x64xf32> to vector<128x64xf32>
    %46 = arith.addf %43, %45 : vector<128x64xf32>
    %47 = vector.extract_strided_slice %22 {offsets = [0, 192], sizes = [128, 32], strides = [1, 1]} : vector<128x224xf32> to vector<128x32xf32>
    %48 = vector.extract_strided_slice %0 {offsets = [1, 0], sizes = [1, 32], strides = [1, 1]} : vector<5x64xf32> to vector<1x32xf32>
    %49 = vector.broadcast %48 : vector<1x32xf32> to vector<128x32xf32>
    %50 = arith.addf %47, %49 : vector<128x32xf32>
    %51 = vector.extract_strided_slice %46 {offsets = [0, 0], sizes = [128, 32], strides = [1, 1]} : vector<128x64xf32> to vector<128x32xf32>
    %cst_14 = arith.constant 0.000000e+00 : f32
    %52 = vector.broadcast %cst_14 : f32 to vector<128x32xf32>
    %53 = arith.subf %52, %51 : vector<128x32xf32>
    %54 = math.exp %53 : vector<128x32xf32>
    %cst_15 = arith.constant 1.000000e+00 : f32
    %55 = vector.broadcast %cst_15 : f32 to vector<128x32xf32>
    %56 = arith.addf %55, %54 : vector<128x32xf32>
    %cst_16 = arith.constant 1.000000e+00 : f32
    %57 = vector.broadcast %cst_16 : f32 to vector<128x32xf32>
    %58 = arith.divf %57, %56 : vector<128x32xf32>
    %59 = vector.extract_strided_slice %46 {offsets = [0, 32], sizes = [128, 32], strides = [1, 1]} : vector<128x64xf32> to vector<128x32xf32>
    %60 = math.tanh %59 : vector<128x32xf32>
    %61 = arith.mulf %58, %60 : vector<128x32xf32>
    %62 = vector.extract_strided_slice %0 {offsets = [2, 0], sizes = [1, 32], strides = [1, 1]} : vector<5x64xf32> to vector<1x32xf32>
    %63 = vector.broadcast %62 : vector<1x32xf32> to vector<128x32xf32>
    %64 = arith.mulf %61, %63 : vector<128x32xf32>
    %65 = vector.extract_strided_slice %0 {offsets = [2, 32], sizes = [1, 32], strides = [1, 1]} : vector<5x64xf32> to vector<1x32xf32>
    %66 = vector.broadcast %65 : vector<1x32xf32> to vector<128x32xf32>
    %67 = arith.addf %64, %66 : vector<128x32xf32>
    %68 = arith.truncf %67 : vector<128x32xf32> to vector<128x32xbf16>
    %c0_17 = arith.constant 0 : index
    %c0_18 = arith.constant 0 : index
    %69 = vector.load %arg3[%c0_17, %c0_18] : memref<32x192xf32, #tpu.memory_space<vmem>>, vector<32x192xf32>
    %70 = arith.truncf %69 : vector<32x192xf32> to vector<32x192xbf16>
    %cst_19 = arith.constant dense<0.000000e+00> : vector<128x192xf32>
    %71 = tpu.matmul %68, %70, %cst_19 {dimension_numbers = #tpu.dot_dimension_numbers<[1], [0], [0], [1], [0, 0, 1, 1], [], []>} : vector<128x32xbf16>, vector<32x192xbf16>, vector<128x192xf32> -> vector<128x192xf32>
    %cst_20 = arith.constant 0.000000e+00 : f32
    %72 = vector.broadcast %cst_20 : f32 to vector<128x64xf32>
    %73 = vector.extract_strided_slice %71 {offsets = [0, 0], sizes = [128, 64], strides = [1, 1]} : vector<128x192xf32> to vector<128x64xf32>
    %c4_i32 = arith.constant 4 : i32
    %74 = tpu.dynamic_rotate %73 by %c4_i32 dim 0 : vector<128x64xf32>, i32 -> vector<128x64xf32>
    %c4_i32_21 = arith.constant 4 : i32
    %75 = vector.broadcast %c4_i32_21 : i32 to vector<128x1xi32>
    %76 = arith.cmpi sge, %17, %75 : vector<128x1xi32>
    %cst_22 = arith.constant 0.000000e+00 : f32
    %77 = vector.shape_cast %76 : vector<128x1xi1> to vector<128x1xi1>
    %78 = vector.broadcast %77 : vector<128x1xi1> to vector<128x64xi1>
    %79 = vector.broadcast %cst_22 : f32 to vector<128x64xf32>
    %80 = arith.select %78, %74, %79 : vector<128x64xi1>, vector<128x64xf32>
    %81 = arith.addf %72, %80 : vector<128x64xf32>
    %82 = vector.extract_strided_slice %71 {offsets = [0, 64], sizes = [128, 64], strides = [1, 1]} : vector<128x192xf32> to vector<128x64xf32>
    %c2_i32_23 = arith.constant 2 : i32
    %83 = tpu.dynamic_rotate %82 by %c2_i32_23 dim 0 : vector<128x64xf32>, i32 -> vector<128x64xf32>
    %c2_i32_24 = arith.constant 2 : i32
    %84 = vector.broadcast %c2_i32_24 : i32 to vector<128x1xi32>
    %85 = arith.cmpi sge, %17, %84 : vector<128x1xi32>
    %cst_25 = arith.constant 0.000000e+00 : f32
    %86 = vector.shape_cast %85 : vector<128x1xi1> to vector<128x1xi1>
    %87 = vector.broadcast %86 : vector<128x1xi1> to vector<128x64xi1>
    %88 = vector.broadcast %cst_25 : f32 to vector<128x64xf32>
    %89 = arith.select %87, %83, %88 : vector<128x64xi1>, vector<128x64xf32>
    %90 = arith.addf %81, %89 : vector<128x64xf32>
    %91 = vector.extract_strided_slice %71 {offsets = [0, 128], sizes = [128, 64], strides = [1, 1]} : vector<128x192xf32> to vector<128x64xf32>
    %92 = arith.addf %90, %91 : vector<128x64xf32>
    %93 = vector.extract_strided_slice %0 {offsets = [3, 0], sizes = [1, 64], strides = [1, 1]} : vector<5x64xf32> to vector<1x64xf32>
    %94 = vector.broadcast %93 : vector<1x64xf32> to vector<128x64xf32>
    %95 = arith.addf %92, %94 : vector<128x64xf32>
    %96 = vector.extract_strided_slice %95 {offsets = [0, 0], sizes = [128, 32], strides = [1, 1]} : vector<128x64xf32> to vector<128x32xf32>
    %cst_26 = arith.constant 0.000000e+00 : f32
    %97 = vector.broadcast %cst_26 : f32 to vector<128x32xf32>
    %98 = arith.subf %97, %96 : vector<128x32xf32>
    %99 = math.exp %98 : vector<128x32xf32>
    %cst_27 = arith.constant 1.000000e+00 : f32
    %100 = vector.broadcast %cst_27 : f32 to vector<128x32xf32>
    %101 = arith.addf %100, %99 : vector<128x32xf32>
    %cst_28 = arith.constant 1.000000e+00 : f32
    %102 = vector.broadcast %cst_28 : f32 to vector<128x32xf32>
    %103 = arith.divf %102, %101 : vector<128x32xf32>
    %104 = vector.extract_strided_slice %95 {offsets = [0, 32], sizes = [128, 32], strides = [1, 1]} : vector<128x64xf32> to vector<128x32xf32>
    %105 = math.tanh %104 : vector<128x32xf32>
    %106 = arith.mulf %103, %105 : vector<128x32xf32>
    %107 = vector.extract_strided_slice %0 {offsets = [4, 0], sizes = [1, 32], strides = [1, 1]} : vector<5x64xf32> to vector<1x32xf32>
    %108 = vector.broadcast %107 : vector<1x32xf32> to vector<128x32xf32>
    %109 = arith.mulf %106, %108 : vector<128x32xf32>
    %110 = vector.extract_strided_slice %0 {offsets = [4, 32], sizes = [1, 32], strides = [1, 1]} : vector<5x64xf32> to vector<1x32xf32>
    %111 = vector.broadcast %110 : vector<1x32xf32> to vector<128x32xf32>
    %112 = arith.addf %109, %111 : vector<128x32xf32>
    %113 = arith.addf %112, %50 : vector<128x32xf32>
    %c0_29 = arith.constant 0 : index
    %c0_30 = arith.constant 0 : index
    %114 = vector.load %arg5[%c0_29, %c0_30] : memref<128x32xf32, #tpu.memory_space<vmem>>, vector<128x32xf32>
    tpu.vector_store %arg5[%c0_29, %c0_30], %113 {strides = array<i32>} : memref<128x32xf32, #tpu.memory_space<vmem>>, vector<128x32xf32>,
    return
  }
  func.func @transform_0(%arg0: i32) -> (i32, i32) {
    %c0_i32 = arith.constant 0 : i32
    %c0_i32_0 = arith.constant 0 : i32
    return %arg0, %c0_i32 : i32, i32
  }
  func.func @transform_1(%arg0: i32) -> (i32, i32) {
    %c0_i32 = arith.constant 0 : i32
    %c0_i32_0 = arith.constant 0 : i32
    %c0_i32_1 = arith.constant 0 : i32
    return %c0_i32, %c0_i32_0 : i32, i32
  }
  func.func @transform_2(%arg0: i32) -> (i32, i32) {
    %c0_i32 = arith.constant 0 : i32
    %c0_i32_0 = arith.constant 0 : i32
    %c0_i32_1 = arith.constant 0 : i32
    return %c0_i32, %c0_i32_0 : i32, i32
  }
  func.func @transform_3(%arg0: i32) -> (i32, i32) {
    %c0_i32 = arith.constant 0 : i32
    %c0_i32_0 = arith.constant 0 : i32
    %c0_i32_1 = arith.constant 0 : i32
    return %c0_i32, %c0_i32_0 : i32, i32
  }
  func.func @transform_4(%arg0: i32) -> (i32, i32) {
    %c0_i32 = arith.constant 0 : i32
    %c0_i32_0 = arith.constant 0 : i32
    return %arg0, %c0_i32 : i32, i32
  }
}

</mosaic_0001>

<bundles_post_ra>
// kernel: tpu_custom_call.1
= control target key start
LH: loop header
LB: loop body
LE: loop exit
PB: predicated region body
PF: predicated region fallthrough
CT: control target
= control target key end

     0   :  { %s2257_s15 = smov 0   ;;  %s3263_s0 = inlined_call_operand.vmem [shape: f32[256,4], index: 0, kind: input, shape index: {}]   ;;  %s3264_s1 = inlined_call_operand.vmem [shape: f32[4,224], index: 1, kind: input, shape index: {}]   ;;  %s3265_s2 = inlined_call_operand.vmem [shape: f32[32,192], index: 2, kind: input, shape index: {}]   ;;  %s3266_s3 = inlined_call_operand.vmem [shape: f32[5,64], index: 3, kind: input, shape index: {}]   ;;  %s3267_s4 = inlined_call_operand.vmem [shape: f32[256,32], index: 4, kind: output, shape index: {}]  }
   0x1 LB: > { %s1988_s16 = sadd.s32 4294967295, %s2227_s15   ;;  %p1992_p0 = scmp.ge.s32.totalorder %s2227_s15, 1  ;;  %s2227_s15 = sphi %s2257_s15, %s14_s15  }
   0x2   : > { %p163_p1 = scmp.lt.s32.totalorder %s2227_s15, 3 }
   0x4   : > { %p164_p2 = pnand %p1992_p0, %p163_p1 }
   0x6   : > { %167 = sbr.rel (%p164_p2) target bundleno = 1083 (0x43b), region = 36 }
   0xb   : > { %v436_v0 = vld [vmem:[%s3264_s1] sm:$0xff]  ;;  %vm467_vm0 = vcmask 1041408   ;;  %s1993_s19 = sshll.u32 %s1988_s16, 4  ;;  %v2229_v3 = vmov 0   ;;  %vm442_vm1 = vcmask 31744   ;;  %v203_v30 = vlaneseq  ;;  %s2230_s24 = smov 64  }
   0xc   : > { %v438_v1 = vcombine.high %v436_v0, %v436_v0  ;;  %v440_v2 = vpack.c.bf16 %v436_v0, %v436_v0  ;;  %506 = vmatprep.mubr.bf16.mxu0 %v2229_v3  ;;  %p190_p3 = scmp.lt.s32.totalorder %s1993_s19, 31  ;;  %1246 = vmatprep.mubr.bf16.mxu1 %v2229_v3  ;;  %s2231_s27 = smov 96  }
   0xd   : > { %v2313_v32 = vshrl.u32 %v203_v30, 7 }
   0xe   : > { %v441_v4 = vpack.c.bf16 %v438_v1, %v438_v1  ;;  %v469_v5 = vsel %vm467_vm0, %v440_v2, 0  ;;  %s3312_s19 = smov (!%p190_p3, %s1993_s19), 31 }
   0xf   : > { %s1994_s20 = sshll.u32 %s3312_s19, 3  ;;  %vm603_vm2 = vcmp.lt.s32.totalorder %v2313_v32, 2  ;;  %vm780_vm3 = vcmp.lt.s32.totalorder %v2313_v32, 1 }
  0x10   : > { %1997 = vmatprep.subr.msk.bf16.mxu0 %vm467_vm0, %v441_v4  ;;  %s2278_s23 = scalar_lea.vmem %s3263_s0, %s1994_s20  ;;  %s3185_s25 = scalar_lea.vmem %s3267_s4, %s1994_s20 }
  0x11   : > { %489 = vmatpush1.bf16.msra.mxu0 %v469_v5  ;;  %v412_v6 = vld [vmem:[%s2278_s23] sm:$0xff]  ;;  %v413_v7 = vld [vmem:[%s2278_s23 + $0x8] sm:$0xff]  ;;  %v414_v9 = vld [vmem:[%s2278_s23 + $0x10] sm:$0xff] }
  0x12   : > { %v428_v8 = vpack.c.bf16 %v413_v7, %v412_v6  ;;  %v415_v10 = vld [vmem:[%s2278_s23 + $0x18] sm:$0xff]  ;;  %v416_v12 = vld [vmem:[%s2278_s23 + $0x20] sm:$0xff]  ;;  %v417_v13 = vld [vmem:[%s2278_s23 + $0x28] sm:$0xff] }
  0x13   : > { %v429_v11 = vpack.c.bf16 %v415_v10, %v414_v9  ;;  %v430_v14 = vpack.c.bf16 %v417_v13, %v416_v12  ;;  %v418_v15 = vld [vmem:[%s2278_s23 + $0x30] sm:$0xff]  ;;  %v419_v16 = vld [vmem:[%s2278_s23 + $0x38] sm:$0xff]  ;;  %v420_v18 = vld [vmem:[%s2278_s23 + $0x40] sm:$0xff] }
  0x14   : > { %1998 = vmatmul.mubr.msk.bf16.vlgmr.msra.gmra.mxu0 %vm442_vm1, %v428_v8  ;;  %v431_v17 = vpack.c.bf16 %v419_v16, %v418_v15  ;;  %v421_v19 = vld [vmem:[%s2278_s23 + $0x48] sm:$0xff]  ;;  %v422_v21 = vld [vmem:[%s2278_s23 + $0x50] sm:$0xff]  ;;  %v423_v22 = vld [vmem:[%s2278_s23 + $0x58] sm:$0xff] }
  0x15   : > { %516 = vmatprep.mubr.bf16.mxu0 %v2229_v3  ;;  %v432_v20 = vpack.c.bf16 %v421_v19, %v420_v18  ;;  %v433_v23 = vpack.c.bf16 %v423_v22, %v422_v21  ;;  %v424_v24 = vld [vmem:[%s2278_s23 + $0x60] sm:$0xff]  ;;  %v425_v25 = vld [vmem:[%s2278_s23 + $0x68] sm:$0xff]  ;;  %v426_v27 = vld [vmem:[%s2278_s23 + $0x70] sm:$0xff] }
  0x16   : > { %v434_v26 = vpack.c.bf16 %v425_v25, %v424_v24  ;;  %v427_v28 = vld [vmem:[%s2278_s23 + $0x78] sm:$0xff] }
  0x17   : > { %v435_v29 = vpack.c.bf16 %v427_v28, %v426_v27 }
  0x1c   : > { %1999 = vmatmul.mubr.msk.bf16.gmra.mxu0 %vm442_vm1, %v429_v11 }
  0x1d   : > { %526 = vmatprep.mubr.bf16.mxu0 %v2229_v3 }
  0x24   : > { %2000 = vmatmul.mubr.msk.bf16.gmra.mxu0 %vm442_vm1, %v430_v14 }
  0x25   : > { %536 = vmatprep.mubr.bf16.mxu0 %v2229_v3 }
  0x2c   : > { %2001 = vmatmul.mubr.msk.bf16.gmra.mxu0 %vm442_vm1, %v431_v17 }
  0x2d   : > { %546 = vmatprep.mubr.bf16.mxu0 %v2229_v3 }
  0x34   : > { %2002 = vmatmul.mubr.msk.bf16.gmra.mxu0 %vm442_vm1, %v432_v20 }
  0x35   : > { %556 = vmatprep.mubr.bf16.mxu0 %v2229_v3 }
  0x3c   : > { %2003 = vmatmul.mubr.msk.bf16.gmra.mxu0 %vm442_vm1, %v433_v23 }
  0x3d   : > { %566 = vmatprep.mubr.bf16.mxu0 %v2229_v3 }
  0x44   : > { %2004 = vmatmul.mubr.msk.bf16.gmra.mxu0 %vm442_vm1, %v434_v26 }
  0x45   : > { %576 = vmatprep.mubr.bf16.mxu0 %v2229_v3 }
  0x4c   : > { %2005 = vmatmul.mubr.msk.bf16.gmra.mxu0 %vm442_vm1, %v435_v29 }
  0xd4   : > { %v2311_v31 = vpop.f32.mrf.mxu0 }
  0xd5   : > { %716 = vrot.lane.b32.xlu0 %v2311_v31, %s2230_s24  ;;  %v587_v35 = vrot.slane %v2311_v31, 6  ;;  %v895_v31 = vsub.s32 0, %v2313_v32 }
  0xd6   : > { %v2317_v33 = vpop.f32.mrf.mxu0 }
  0xd8   : > { %v512_v34 = vpop.f32.mrf.mxu0 }
  0xd9   : > { %v588_v36 = vrot.slane %v512_v34, 6  ;;  %718 = vrot.lane.b32.xlu1 %v512_v34, %s2230_s24 }
  0xda   : > { %v2322_v37 = vpop.f32.mrf.mxu0 }
  0xdb   : > { %v2328_v38 = vsel %vm603_vm2, %v587_v35, %v588_v36 }
  0xdc   : > { %v518_v39 = vpop.f32.mrf.mxu0 }
  0xdd   : > { %v589_v40 = vrot.slane %v518_v39, 6  ;;  %720 = vrot.lane.b32.xlu1 %v518_v39, %s2230_s24 }
  0xde   : > { %v2331_v41 = vpop.f32.mrf.mxu0 }
  0xdf   : > { %v2335_v42 = vsel %vm603_vm2, %v588_v36, %v589_v40  ;;  %v206_v36 = vadd.s32 16, %v2313_v32 }
  0xe0   : > { %v522_v43 = vpop.f32.mrf.mxu0 }
  0xe1   : > { %v590_v44 = vrot.slane %v522_v43, 6 }
  0xe2   : > { %v2337_v45 = vpop.f32.mrf.mxu0 }
  0xe3   : > { %v2341_v46 = vsel %vm603_vm2, %v589_v40, %v590_v44  ;;  %v2433_v40 = vand.u32 15, %v206_v36 }
  0xe4   : > { %v528_v47 = vpop.f32.mrf.mxu0 }
  0xe5   : > { %v591_v48 = vrot.slane %v528_v47, 6  ;;  %724 = vrot.lane.b32.xlu1 %v528_v47, %s2230_s24  ;;  %vm622_vm4 = vcmp.ge.s32.totalorder %v2433_v40, 2  ;;  %vm799_vm5 = vcmp.ge.s32.totalorder %v2433_v40, 1 }
  0xe6   : > { %v2344_v49 = vpop.f32.mrf.mxu0 }
  0xe7   : > { %v2348_v50 = vsel %vm603_vm2, %v590_v44, %v591_v48  ;;  %v2438_v44 = vld [vmem:[%s3266_s3] sm:$0x1f] }
  0xe8   : > { %v532_v51 = vpop.f32.mrf.mxu0 }
  0xe9   : > { %v592_v52 = vrot.slane %v532_v51, 6 }
  0xea   : > { %v2350_v53 = vpop.f32.mrf.mxu0 }
  0xeb   : > { %v2354_v54 = vsel %vm603_vm2, %v591_v48, %v592_v52 }
  0xec   : > { %v538_v55 = vpop.f32.mrf.mxu0 }
  0xed   : > { %v593_v56 = vrot.slane %v538_v55, 6  ;;  %728 = vrot.lane.b32.xlu1 %v538_v55, %s2230_s24 }
  0xee   : > { %v2357_v57 = vpop.f32.mrf.mxu0 }
  0xef   : > { %v2361_v58 = vsel %vm603_vm2, %v592_v52, %v593_v56 }
  0xf0   : > { %v542_v59 = vpop.f32.mrf.mxu0 }
  0xf1   : > { %v594_v60 = vrot.slane %v542_v59, 6 }
  0xf2   : > { %v2363_v61 = vpop.f32.mrf.mxu0 }
  0xf3   : > { %v2367_v62 = vsel %vm603_vm2, %v593_v56, %v594_v60 }
  0xf4   : > { %v548_v63 = vpop.f32.mrf.mxu0 }
  0xf5   : > { %v595_v0 = vrot.slane %v548_v63, 6  ;;  %732 = vrot.lane.b32.xlu1 %v548_v63, %s2230_s24  ;;  %v670_v63 = vsel %vm622_vm4, %v2335_v42, 0.0  ;;  %v208_v42 = vadd.s32 32, %v2313_v32 }
  0xf6   : > { %v2370_v1 = vpop.f32.mrf.mxu0 }
  0xf7   : > { %v2374_v2 = vsel %vm603_vm2, %v594_v60, %v595_v0 }
  0xf8   : > { %v552_v4 = vpop.f32.mrf.mxu0 }
  0xf9   : > { %v596_v5 = vrot.slane %v552_v4, 6 }
  0xfa   : > { %v2376_v6 = vpop.f32.mrf.mxu0 }
  0xfb   : > { %v2380_v7 = vsel %vm603_vm2, %v595_v0, %v596_v5 }
  0xfc   : > { %v558_v8 = vpop.f32.mrf.mxu0 }
  0xfd   : > { %v597_v9 = vrot.slane %v558_v8, 6  ;;  %736 = vrot.lane.b32.xlu1 %v558_v8, %s2230_s24 }
  0xfe   : > { %v2383_v10 = vpop.f32.mrf.mxu0 }
  0xff   : > { %v2387_v11 = vsel %vm603_vm2, %v596_v5, %v597_v9 }
 0x100   : > { %v562_v12 = vpop.f32.mrf.mxu0 }
 0x101   : > { %v598_v13 = vrot.slane %v562_v12, 6 }
 0x102   : > { %v2389_v14 = vpop.f32.mrf.mxu0 }
 0x103   : > { %v2393_v15 = vsel %vm603_vm2, %v597_v9, %v598_v13 }
 0x104   : > { %v568_v16 = vpop.f32.mrf.mxu0 }
 0x105   : > { %v599_v17 = vrot.slane %v568_v16, 6  ;;  %740 = vrot.lane.b32.xlu1 %v568_v16, %s2230_s24  ;;  %v210_v16 = vadd.s32 48, %v2313_v32 }
 0x106   : > { %v2396_v18 = vpop.f32.mrf.mxu0 }
 0x107   : > { %3279 = vst [vmem:[#allocation2_spill] sm:$0xff] %v2396_v18  ;;  %v2400_v19 = vsel %vm603_vm2, %v598_v13, %v599_v17  ;;  %v2467_v13 = vand.u32 15, %v2313_v32 }
 0x108   : > { %v572_v20 = vpop.f32.mrf.mxu0 }
 0x109   : > { %v600_v21 = vrot.slane %v572_v20, 6  ;;  %3282 = vst [vmem:[#allocation5_spill] sm:$0xff] %v2467_v13  ;;  %vm620_vm6 = vcmp.ge.s32.totalorder %v2467_v13, 2  ;;  %vm797_vm7 = vcmp.ge.s32.totalorder %v2467_v13, 1 }
 0x10a   : > { %v2402_v22 = vpop.f32.mrf.mxu0 }
 0x10b   : > { %3280 = vst [vmem:[#allocation3_spill] sm:$0xff] %v2402_v22  ;;  %v2406_v23 = vsel %vm603_vm2, %v599_v17, %v600_v21  ;;  %v2470_v17 = vand.u32 15, %v208_v42 }
 0x10c   : > { %v578_v24 = vpop.f32.mrf.mxu0 }
 0x10d   : > { %v601_v25 = vrot.slane %v578_v24, 6  ;;  %744 = vrot.lane.b32.xlu1 %v578_v24, %s2230_s24  ;;  %v2477_v24 = vand.u32 15, %v210_v16  ;;  %vm624_vm8 = vcmp.ge.s32.totalorder %v2470_v17, 2  ;;  %vm801_vm9 = vcmp.ge.s32.totalorder %v2470_v17, 1 }
 0x10e   : > { %v2409_v26 = vpop.f32.mrf.mxu0 }
 0x10f   : > { %3281 = vst [vmem:[#allocation4_spill] sm:$0xff] %v2409_v26  ;;  %v2413_v27 = vsel %vm603_vm2, %v600_v21, %v601_v25  ;;  %vm626_vm10 = vcmp.ge.s32.totalorder %v2477_v24, 2  ;;  %vm803_vm11 = vcmp.ge.s32.totalorder %v2477_v24, 1 }
 0x110   : > { %v582_v28 = vpop.f32.mrf.mxu0 }
 0x111   : > { %v602_v29 = vrot.slane %v582_v28, 6  ;;  %746 = vrot.lane.b32.xlu0 %v582_v28, %s2230_s24 }
 0x113   : > { %v2418_v30 = vsel %vm603_vm2, %v601_v25, %v602_v29  ;;  %v619_v34 = vsel %vm603_vm2, %v602_v29, %v587_v35 }
 0x114   : > { %v668_v29 = vsel %vm620_vm6, %v619_v34, 0.0 }
 0x115   : > { %722 = vrot.lane.b32.xlu0 %v522_v43, %s2230_s24 }
 0x119   : > { %726 = vrot.lane.b32.xlu0 %v532_v51, %s2230_s24  ;;  %v2443_v51 = vrot.slane %v2438_v44, %v895_v31 }
 0x11d   : > { %730 = vrot.lane.b32.xlu0 %v542_v59, %s2230_s24 }
 0x121   : > { %734 = vrot.lane.b32.xlu0 %v552_v4, %s2230_s24 }
 0x125   : > { %738 = vrot.lane.b32.xlu0 %v562_v12, %s2230_s24 }
 0x129   : > { %742 = vrot.lane.b32.xlu0 %v572_v20, %s2230_s24 }
 0x147   : > { %v717_v39 = vpop.permute.xlu0 %716 }
 0x148   : > { %v764_v43 = vrot.slane %v717_v39, 7 }
 0x14b   : > { %v719_v35 = vpop.permute.xlu1 %718 }
 0x14c   : > { %v765_v47 = vrot.slane %v719_v35, 7 }
 0x14e   : > { %v795_v48 = vsel %vm780_vm3, %v764_v43, %v765_v47 }
 0x14f   : > { %v862_v52 = vadd.f32 %v795_v48, %v2328_v38  ;;  %v721_v55 = vpop.permute.xlu1 %720  ;;  %v212_v48 = vadd.s32 64, %v2313_v32 }
 0x150   : > { %v766_v56 = vrot.slane %v721_v55, 7 }
 0x151   : > { %v878_v59 = vadd.f32 %v862_v52, %v2322_v37  ;;  %v214_v52 = vadd.s32 80, %v2313_v32 }
 0x152   : > { %v794_v60 = vsel %vm780_vm3, %v765_v47, %v766_v56 }
 0x153   : > { %v2455_v0 = vadd.f32 %v2443_v51, %v878_v59  ;;  %v847_v4 = vsel %vm799_vm5, %v794_v60, 0.0 }
 0x154   : > { %v863_v38 = vadd.f32 %v847_v4, %v670_v63  ;;  %v672_v63 = vsel %vm624_vm8, %v2348_v50, 0.0 }
 0x155   : > { %2028 = vtanh.f32 %v2455_v0 }
 0x156   : > { %v879_v5 = vadd.f32 %v863_v38, %v2331_v41 }
 0x157   : > { %v725_v25 = vpop.permute.xlu1 %724 }
 0x158   : > { %v2460_v8 = vadd.f32 %v2443_v51, %v879_v5  ;;  %v768_v31 = vrot.slane %v725_v25, 7  ;;  %v2504_v25 = vand.u32 15, %v212_v48 }
 0x15a   : > { %2030 = vtanh.f32 %v2460_v8  ;;  %vm628_vm12 = vcmp.ge.s32.totalorder %v2504_v25, 2  ;;  %vm805_vm14 = vcmp.ge.s32.totalorder %v2504_v25, 1 }
 0x15f   : > { %v729_v55 = vpop.permute.xlu1 %728 }
 0x162   : > { %v2029_v9 = vpop.eup %2028 }
 0x163   : > { %1067 = vrot.lane.b32.xlu1 %v2029_v9, %s2231_s27  ;;  %v770_v9 = vrot.slane %v729_v55, 7 }
 0x167   : > { %v2031_v12 = vpop.eup %2030 }
 0x168   : > { %1069 = vrot.lane.b32.xlu1 %v2031_v12, %s2231_s27 }
 0x183   : > { %v2472_v20 = vpop.permute.xlu0 %746 }
 0x184   : > { %v779_v21 = vrot.slane %v2472_v20, 7 }
 0x186   : > { %v796_v28 = vsel %vm780_vm3, %v779_v21, %v764_v43  ;;  %v216_v43 = vadd.s32 96, %v2313_v32 }
 0x187   : > { %v845_v36 = vsel %vm797_vm7, %v796_v28, 0.0  ;;  %v723_v39 = vpop.permute.xlu0 %722  ;;  %v2506_v28 = vand.u32 15, %v214_v52 }
 0x188   : > { %v861_v35 = vadd.f32 %v845_v36, %v668_v29  ;;  %v767_v47 = vrot.slane %v723_v39, 7  ;;  %v674_v36 = vsel %vm626_vm10, %v2361_v58, 0.0  ;;  %v2516_v39 = vand.u32 15, %v216_v43 }
 0x189   : > { %vm630_vm13 = vcmp.ge.s32.totalorder %v2506_v28, 2  ;;  %vm807_vm0 = vcmp.ge.s32.totalorder %v2506_v28, 1 }
 0x18a   : > { %v877_v59 = vadd.f32 %v861_v35, %v2317_v33  ;;  %v792_v34 = vsel %vm780_vm3, %v767_v47, %v768_v31  ;;  %v793_v60 = vsel %vm780_vm3, %v766_v56, %v767_v47  ;;  %v733_v56 = vpop.permute.xlu1 %732  ;;  %vm632_vm15 = vcmp.ge.s32.totalorder %v2516_v39, 2 }
 0x18b   : > { %v849_v4 = vsel %vm801_vm9, %v792_v34, 0.0  ;;  %v864_v38 = vadd.f32 %v793_v60, %v2341_v46  ;;  %v727_v5 = vpop.permute.xlu0 %726  ;;  %v772_v58 = vrot.slane %v733_v56, 7  ;;  %vm809_vm1 = vcmp.ge.s32.totalorder %v2516_v39, 1 }
 0x18c   : > { %v2502_v12 = vadd.f32 %v2443_v51, %v877_v59  ;;  %v865_v42 = vadd.f32 %v849_v4, %v672_v63  ;;  %v769_v16 = vrot.slane %v727_v5, 7  ;;  %vm1343_vm9 = vcmp.lt.s32.totalorder %v2313_v32, 4 }
 0x18d   : > { %v880_v50 = vadd.f32 %v864_v38, %v2337_v45 }
 0x18e   : > { %2032 = vtanh.f32 %v2502_v12  ;;  %v881_v46 = vadd.f32 %v865_v42, %v2344_v49  ;;  %v790_v29 = vsel %vm780_vm3, %v769_v16, %v770_v9  ;;  %v791_v35 = vsel %vm780_vm3, %v768_v31, %v769_v16  ;;  %v737_v43 = vpop.permute.xlu1 %736 }
 0x18f   : > { %v851_v47 = vsel %vm803_vm11, %v790_v29, 0.0  ;;  %v731_v48 = vpop.permute.xlu0 %730  ;;  %v866_v55 = vadd.f32 %v791_v35, %v2354_v54  ;;  %v2529_v60 = vadd.f32 %v2443_v51, %v880_v50  ;;  %v218_v54 = vadd.s32 112, %v2313_v32 }
 0x190   : > { %v2523_v52 = vadd.f32 %v2443_v51, %v881_v46  ;;  %v867_v59 = vadd.f32 %v851_v47, %v674_v36  ;;  %v771_v34 = vrot.slane %v731_v48, 7  ;;  %v676_v42 = vsel %vm628_vm12, %v2374_v2, 0.0 }
 0x191   : > { %v882_v31 = vadd.f32 %v866_v55, %v2350_v53  ;;  %v774_v16 = vrot.slane %v737_v43, 7  ;;  %v678_v35 = vsel %vm630_vm13, %v2387_v11, 0.0  ;;  %v1182_v11 = vld [vmem:[%s3265_s2 + $0x28] sm:$0xff]  ;;  %vm1362_vm11 = vcmp.ge.s32.totalorder %v2433_v40, 4 }
 0x192   : > { %v883_v63 = vadd.f32 %v867_v59, %v2357_v57  ;;  %v788_v4 = vsel %vm780_vm3, %v771_v34, %v772_v58  ;;  %v789_v38 = vsel %vm780_vm3, %v770_v9, %v771_v34  ;;  %2034 = vtanh.f32 %v2523_v52  ;;  %v2547_v50 = vpop.permute.xlu1 %740  ;;  %v1184_v59 = vld [vmem:[%s3265_s2 + $0x38] sm:$0xff] }
 0x193   : > { %v735_v5 = vpop.permute.xlu0 %734  ;;  %v2550_v46 = vadd.f32 %v2443_v51, %v882_v31  ;;  %v853_v29 = vsel %vm805_vm14, %v788_v4, 0.0  ;;  %v868_v36 = vadd.f32 %v789_v38, %v2367_v62  ;;  %2036 = vtanh.f32 %v2529_v60 }
 0x194   : > { %v2545_v56 = vadd.f32 %v2443_v51, %v883_v63  ;;  %v773_v9 = vrot.slane %v735_v5, 7  ;;  %v869_v2 = vadd.f32 %v853_v29, %v676_v42  ;;  %v776_v43 = vrot.slane %v2547_v50, 7 }
 0x195   : > { %v884_v47 = vadd.f32 %v868_v36, %v2363_v61  ;;  %v1131_v31 = vsub.s32 2, %v2313_v32  ;;  %v1188_v29 = vpack.c.bf16 %v1184_v59, %v1182_v11  ;;  %vm1364_vm14 = vcmp.ge.s32.totalorder %v2470_v17, 4  ;;  %v2220_v17 = vld [vmem:[%s3266_s3] sm:$0x1f] }
 0x196   : > { %v786_v48 = vsel %vm780_vm3, %v773_v9, %v774_v16  ;;  %v787_v55 = vsel %vm780_vm3, %v772_v58, %v773_v9  ;;  %2038 = vtanh.f32 %v2545_v56  ;;  %v885_v34 = vadd.f32 %v869_v2, %v2370_v1  ;;  %v745_v38 = vpop.permute.xlu1 %744 }
 0x197   : > { %v739_v62 = vpop.permute.xlu0 %738  ;;  %2040 = vtanh.f32 %v2550_v46  ;;  %v855_v58 = vsel %vm807_vm0, %v786_v48, 0.0  ;;  %v870_v63 = vadd.f32 %v787_v55, %v2380_v7  ;;  %v2577_v5 = vadd.f32 %v2443_v51, %v884_v47  ;;  %1226 = vmatprep.subr.bf16.mxu1 %v1188_v29 }
 0x198   : > { %v775_v4 = vrot.slane %v739_v62, 7  ;;  %v2580_v42 = vadd.f32 %v2443_v51, %v885_v34  ;;  %v871_v50 = vadd.f32 %v855_v58, %v678_v35  ;;  %v2582_v9 = vand.u32 15, %v218_v54  ;;  %v1181_v35 = vld [vmem:[%s3265_s2 + $0x20] sm:$0xff] }
 0x199   : > { %v886_v2 = vadd.f32 %v870_v63, %v2376_v6  ;;  %v680_v7 = vsel %vm632_vm15, %v2400_v19, 0.0  ;;  %v2595_v54 = vrot.slane %v2438_v44, %v1131_v31  ;;  %v1183_v19 = vld [vmem:[%s3265_s2 + $0x30] sm:$0xff]  ;;  %v778_v11 = vrot.slane %v745_v38, 7 }
 0x19a   : > { %v784_v48 = vsel %vm780_vm3, %v775_v4, %v776_v43  ;;  %v887_v47 = vadd.f32 %v871_v50, %v2383_v10  ;;  %v785_v55 = vsel %vm780_vm3, %v774_v16, %v775_v4  ;;  %2042 = vtanh.f32 %v2580_v42 }
 0x19b   : > { %v2033_v36 = vpop.eup %2032  ;;  %v743_v62 = vpop.permute.xlu0 %742  ;;  %v2605_v16 = vadd.f32 %v2443_v51, %v886_v2  ;;  %v857_v59 = vsel %vm809_vm1, %v784_v48, 0.0  ;;  %2044 = vtanh.f32 %v2577_v5  ;;  %v872_v31 = vadd.f32 %v785_v55, %v2393_v15 }
 0x19c   : > { %1065 = vrot.lane.b32.xlu0 %v2033_v36, %s2231_s27  ;;  %v2611_v34 = vadd.f32 %v2443_v51, %v887_v47  ;;  %v873_v58 = vadd.f32 %v857_v59, %v680_v7  ;;  %v781_v63 = vsel %vm780_vm3, %v778_v11, %v779_v21  ;;  %v777_v4 = vrot.slane %v743_v62, 7  ;;  %v1178_v7 = vld [vmem:[%s3265_s2 + $0x8] sm:$0xff] }
 0x19d   : > { %v1187_v38 = vpack.c.bf16 %v1183_v19, %v1181_v35  ;;  %vm634_vm5 = vcmp.ge.s32.totalorder %v2582_v9, 2  ;;  %v888_v50 = vadd.f32 %v872_v31, %v2389_v14  ;;  %vm811_vm7 = vcmp.ge.s32.totalorder %v2582_v9, 1  ;;  %v1177_v19 = vld [vmem:[%s3265_s2] sm:$0xff]  ;;  %v2657_v31 = vpop.f32.mrf.mxu0 }
 0x19e   : > { %v889_v29 = vadd.f32 %v873_v58, %v2396_v18  ;;  %2046 = vtanh.f32 %v2605_v16  ;;  %v782_v20 = vsel %vm780_vm3, %v777_v4, %v778_v11  ;;  %v783_v21 = vsel %vm780_vm3, %v776_v43, %v777_v4  ;;  %v1180_v43 = vld [vmem:[%s3265_s2 + $0x18] sm:$0xff]  ;;  %v1179_v11 = vld [vmem:[%s3265_s2 + $0x10] sm:$0xff]  ;;  %3283 = vst [vmem:[#allocation6_spill] sm:$0xff] %v2657_v31 }
 0x19f   : > { %v2035_v15 = vpop.eup %2034  ;;  %1227 = vmatpush1.bf16.msra.mxu1 %v1187_v38  ;;  %v876_v36 = vadd.f32 %v781_v63, %v2418_v30  ;;  %2048 = vtanh.f32 %v2611_v34  ;;  %v2632_v2 = vadd.f32 %v2443_v51, %v888_v50  ;;  %v682_v30 = vsel %vm634_vm5, %v2413_v27, 0.0 }
 0x1a0   : > { %1150 = vrot.lane.b32.xlu0 %v2595_v54, %s2231_s27  ;;  %v2635_v48 = vadd.f32 %v2443_v51, %v889_v29  ;;  %1073 = vrot.lane.b32.xlu1 %v2035_v15, %s2231_s27  ;;  %v2037_v47 = vpop.eup %2036  ;;  %v859_v55 = vsel %vm811_vm7, %v782_v20, 0.0  ;;  %v874_v62 = vadd.f32 %v783_v21, %v2406_v23  ;;  %v1186_v58 = vpack.c.bf16 %v1180_v43, %v1178_v7 }
 0x1a1   : > { %v875_v35 = vadd.f32 %v859_v55, %v682_v30  ;;  %2050 = vtanh.f32 %v2632_v2  ;;  %v892_v63 = vadd.f32 %v876_v36, %v2657_v31  ;;  %v1185_v50 = vpack.c.bf16 %v1179_v11, %v1177_v19 }
 0x1a2   : > { %v890_v27 = vadd.f32 %v874_v62, %v2402_v22  ;;  %2052 = vtanh.f32 %v2635_v48  ;;  %1228 = vmatprep.subr.bf16.mxu1 %v1186_v58  ;;  %v938_v62 = vsub.f32 0.0, %v2455_v0  ;;  %v940_v58 = vsub.f32 0.0, %v2529_v60 }
 0x1a3   : > { %v2039_v59 = vpop.eup %2038  ;;  %v891_v4 = vadd.f32 %v875_v35, %v2409_v26  ;;  %1229 = vmatpush1.bf16.msra.mxu1 %v1185_v50  ;;  %v2673_v20 = vadd.f32 %v2443_v51, %v892_v63  ;;  %v937_v35 = vsub.f32 0.0, %v2502_v12  ;;  %v945_v12 = vsub.f32 0.0, %v2580_v42 }
 0x1a4   : > { %1071 = vrot.lane.b32.xlu0 %v2037_v47, %s2231_s27  ;;  %v2041_v23 = vpop.eup %2040  ;;  %1077 = vrot.lane.b32.xlu1 %v2039_v59, %s2231_s27  ;;  %v2666_v38 = vadd.f32 %v2443_v51, %v890_v27  ;;  %v955_v19 = vmul.f32 1.442695, %v938_v62  ;;  %v939_v59 = vsub.f32 0.0, %v2460_v8  ;;  %v941_v27 = vsub.f32 0.0, %v2523_v52 }
 0x1a5   : > { %v2669_v29 = vadd.f32 %v2443_v51, %v891_v4  ;;  %v953_v11 = vmul.f32 1.442695, %v937_v35  ;;  %v943_v4 = vsub.f32 0.0, %v2545_v56  ;;  %v959_v50 = vmul.f32 1.442695, %v940_v58 }
 0x1a6   : > { %2054 = vtanh.f32 %v2666_v38  ;;  %v961_v63 = vmul.f32 1.442695, %v941_v27  ;;  %v944_v8 = vsub.f32 0.0, %v2577_v5  ;;  %v969_v60 = vmul.f32 1.442695, %v945_v12 }
 0x1a7   : > { %v2043_v15 = vpop.eup %2042  ;;  %2056 = vtanh.f32 %v2669_v29  ;;  %v965_v0 = vmul.f32 1.442695, %v943_v4  ;;  %v948_v42 = vsub.f32 0.0, %v2632_v2  ;;  %v952_v2 = vsub.f32 0.0, %v2673_v20 }
 0x1a8   : > { %1075 = vrot.lane.b32.xlu0 %v2041_v23, %s2231_s27  ;;  %v2045_v21 = vpop.eup %2044  ;;  %1081 = vrot.lane.b32.xlu1 %v2043_v15, %s2231_s27  ;;  %2058 = vtanh.f32 %v2673_v20  ;;  %v957_v23 = vmul.f32 1.442695, %v939_v59  ;;  %v942_v15 = vsub.f32 0.0, %v2550_v46  ;;  %v967_v56 = vmul.f32 1.442695, %v944_v8 }
 0x1a9   : > { %2060 = vpow2.f32 %v955_v19  ;;  %v975_v62 = vmul.f32 1.442695, %v948_v42  ;;  %vm1189_vm3 = vcmask 261120   ;;  %vm1372_vm0 = vcmp.ge.s32.totalorder %v2516_v39, 4 }
 0x1aa   : > { %2062 = vpow2.f32 %v953_v11  ;;  %v951_v11 = vsub.f32 0.0, %v2669_v29 }
 0x1ab   : > { %v2047_v36 = vpop.eup %2046  ;;  %2064 = vpow2.f32 %v957_v23 }
 0x1ac   : > { %1079 = vrot.lane.b32.xlu0 %v2045_v21, %s2231_s27  ;;  %v2049_v7 = vpop.eup %2048  ;;  %2066 = vpow2.f32 %v961_v63  ;;  %v963_v21 = vmul.f32 1.442695, %v942_v15  ;;  %v981_v4 = vmul.f32 1.442695, %v951_v11 }
 0x1ad   : > { %1085 = vrot.lane.b32.xlu1 %v2049_v7, %s2231_s27  ;;  %2068 = vpow2.f32 %v959_v50  ;;  %v947_v7 = vsub.f32 0.0, %v2611_v34  ;;  %v950_v34 = vsub.f32 0.0, %v2666_v38  ;;  %v983_v50 = vmul.f32 1.442695, %v952_v2 }
 0x1ae   : > { %v2051_v43 = vpop.eup %2050  ;;  %2070 = vpow2.f32 %v965_v0 }
 0x1af   : > { %v2053_v51 = vpop.eup %2052  ;;  %2072 = vpow2.f32 %v963_v21 }
 0x1b0   : > { %1083 = vrot.lane.b32.xlu0 %v2047_v36, %s2231_s27  ;;  %v946_v36 = vsub.f32 0.0, %v2605_v16  ;;  %2074 = vpow2.f32 %v969_v60 }
 0x1b1   : > { %1089 = vrot.lane.b32.xlu1 %v2053_v51, %s2231_s27  ;;  %2076 = vpow2.f32 %v967_v56 }
 0x1b2   : > { %v971_v51 = vmul.f32 1.442695, %v946_v36 }
 0x1b3   : > { %v2055_v47 = vpop.eup %2054 }
 0x1b4   : > { %1087 = vrot.lane.b32.xlu0 %v2051_v43, %s2231_s27  ;;  %v2057_v30 = vpop.eup %2056 }
 0x1b5   : > { %1093 = vrot.lane.b32.xlu1 %v2057_v30, %s2231_s27  ;;  %v2059_v55 = vpop.eup %2058  ;;  %v949_v30 = vsub.f32 0.0, %v2635_v48  ;;  %v979_v48 = vmul.f32 1.442695, %v950_v34 }
 0x1b6   : > { %v2061_v52 = vpop.eup %2060 }
 0x1b7   : > { %v2063_v43 = vpop.eup %2062  ;;  %v986_v46 = vadd.f32 1.0, %v2061_v52  ;;  %v977_v35 = vmul.f32 1.442695, %v949_v30 }
 0x1b8   : > { %1091 = vrot.lane.b32.xlu0 %v2055_v47, %s2231_s27  ;;  %v973_v47 = vmul.f32 1.442695, %v947_v7  ;;  %v985_v5 = vadd.f32 1.0, %v2063_v43 }
 0x1b9   : > { %2078 = vrcp.f32 %v986_v46 }
 0x1ba   : > { %2080 = vpow2.f32 %v971_v51 }
 0x1bb   : > { %2082 = vpow2.f32 %v973_v47 }
 0x1bc   : > { %1095 = vrot.lane.b32.xlu0 %v2059_v55, %s2231_s27  ;;  %v2065_v55 = vpop.eup %2064  ;;  %2084 = vrcp.f32 %v985_v5 }
 0x1bd   : > { %v2067_v16 = vpop.eup %2066  ;;  %v987_v59 = vadd.f32 1.0, %v2065_v55  ;;  %2086 = vpow2.f32 %v975_v62 }
 0x1be   : > { %v2069_v19 = vpop.eup %2068  ;;  %v989_v27 = vadd.f32 1.0, %v2067_v16  ;;  %2088 = vpow2.f32 %v977_v35 }
 0x1bf   : > { %v2071_v58 = vpop.eup %2070  ;;  %v988_v23 = vadd.f32 1.0, %v2069_v19  ;;  %2090 = vrcp.f32 %v987_v59 }
 0x1c0   : > { %v2073_v63 = vpop.eup %2072  ;;  %2092 = vrcp.f32 %v989_v27  ;;  %v991_v38 = vadd.f32 1.0, %v2071_v58 }
 0x1c1   : > { %2094 = vpow2.f32 %v979_v48  ;;  %v2075_v15 = vpop.eup %2074  ;;  %v990_v0 = vadd.f32 1.0, %v2073_v63 }
 0x1c2   : > { %2096 = vrcp.f32 %v988_v23  ;;  %v2077_v29 = vpop.eup %2076  ;;  %v993_v8 = vadd.f32 1.0, %v2075_v15 }
 0x1c3   : > { %2098 = vpow2.f32 %v981_v4  ;;  %v992_v60 = vadd.f32 1.0, %v2077_v29 }
 0x1c4   : > { %2100 = vpow2.f32 %v983_v50 }
 0x1c5   : > { %2102 = vrcp.f32 %v991_v38 }
 0x1c6   : > { %v2079_v20 = vpop.eup %2078  ;;  %2104 = vrcp.f32 %v990_v0 }
 0x1c7   : > { %v2081_v21 = vpop.eup %2080  ;;  %2106 = vrcp.f32 %v993_v8 }
 0x1c8   : > { %v2083_v52 = vpop.eup %2082  ;;  %2108 = vrcp.f32 %v992_v60  ;;  %v994_v5 = vadd.f32 1.0, %v2081_v21 }
 0x1c9   : > { %v2085_v7 = vpop.eup %2084  ;;  %v995_v51 = vadd.f32 1.0, %v2083_v52 }
 0x1ca   : > { %v2087_v47 = vpop.eup %2086 }
 0x1cb   : > { %v2089_v55 = vpop.eup %2088  ;;  %2110 = vrcp.f32 %v995_v51  ;;  %v996_v2 = vadd.f32 1.0, %v2087_v47 }
 0x1cc   : > { %v2091_v62 = vpop.eup %2090  ;;  %v997_v58 = vadd.f32 1.0, %v2089_v55  ;;  %2112 = vrcp.f32 %v994_v5 }
 0x1cd   : > { %v2093_v19 = vpop.eup %2092  ;;  %2114 = vrcp.f32 %v996_v2 }
 0x1ce   : > { %v2095_v27 = vpop.eup %2094  ;;  %2116 = vrcp.f32 %v997_v58 }
 0x1cf   : > { %v2097_v23 = vpop.eup %2096  ;;  %v998_v21 = vadd.f32 1.0, %v2095_v27 }
 0x1d0   : > { %v2099_v4 = vpop.eup %2098 }
 0x1d1   : > { %v2101_v15 = vpop.eup %2100  ;;  %v999_v60 = vadd.f32 1.0, %v2099_v4  ;;  %2118 = vrcp.f32 %v998_v21 }
 0x1d2   : > { %v1000_v5 = vadd.f32 1.0, %v2101_v15 }
 0x1d3   : > { %2120 = vrcp.f32 %v999_v60 }
 0x1d4   : > { %2122 = vrcp.f32 %v1000_v5 }
 0x1d5   : > { %v1068_v12 = vpop.permute.xlu1 %1067 }
 0x1d6   : > { %v1114_v36 = vmul.f32 %v2079_v20, %v1068_v12  ;;  %v2103_v12 = vpop.eup %2102 }
 0x1d7   : > { %v2105_v8 = vpop.eup %2104 }
 0x1d8   : > { %v1134_v42 = vmul.f32 %v2595_v54, %v1114_v36  ;;  %v2107_v51 = vpop.eup %2106 }
 0x1d9   : > { %v2109_v55 = vpop.eup %2108 }
 0x1da   : > { %v1070_v46 = vpop.permute.xlu1 %1069  ;;  %v2111_v2 = vpop.eup %2110 }
 0x1db   : > { %v1115_v11 = vmul.f32 %v2091_v62, %v1070_v46  ;;  %v2113_v58 = vpop.eup %2112 }
 0x1dd   : > { %v1135_v0 = vmul.f32 %v2595_v54, %v1115_v11 }
 0x20e   : > { %v1066_v56 = vpop.permute.xlu0 %1065 }
 0x20f   : > { %v1113_v43 = vmul.f32 %v2085_v7, %v1066_v56 }
 0x211   : > { %v1133_v30 = vmul.f32 %v2595_v54, %v1113_v43 }
 0x212   : > { %v2705_v16 = vpop.permute.xlu0 %1150  ;;  %v1074_v59 = vpop.permute.xlu1 %1073 }
 0x213   : > { %v1153_v34 = vadd.f32 %v2705_v16, %v1133_v30  ;;  %v1154_v35 = vadd.f32 %v2705_v16, %v1134_v42  ;;  %v1117_v50 = vmul.f32 %v2093_v19, %v1074_v59  ;;  %v1155_v52 = vadd.f32 %v2705_v16, %v1135_v0 }
 0x215   : > { %v1169_v48 = vpack.c.bf16 %v1154_v35, %v1153_v34  ;;  %v1137_v7 = vmul.f32 %v2595_v54, %v1117_v50 }
 0x216   : > { %v1072_v63 = vpop.permute.xlu0 %1071  ;;  %v1078_v29 = vpop.permute.xlu1 %1077 }
 0x217   : > { %v1116_v38 = vmul.f32 %v2097_v23, %v1072_v63  ;;  %2006 = vmatmul.mubr.msk.bf16.vlgmr.msra.gmra.mxu1 %vm1189_vm3, %v1169_v48  ;;  %v1119_v56 = vmul.f32 %v2103_v12, %v1078_v29  ;;  %v1157_v19 = vadd.f32 %v2705_v16, %v1137_v7  ;;  %v2115_v29 = vpop.eup %2114 }
 0x218   : > { %1256 = vmatprep.mubr.bf16.mxu1 %v2229_v3  ;;  %v2117_v21 = vpop.eup %2116 }
 0x219   : > { %v1136_v20 = vmul.f32 %v2595_v54, %v1116_v38  ;;  %v1139_v35 = vmul.f32 %v2595_v54, %v1119_v56 }
 0x21a   : > { %v1076_v36 = vpop.permute.xlu0 %1075  ;;  %v1082_v42 = vpop.permute.xlu1 %1081 }
 0x21b   : > { %v1156_v43 = vadd.f32 %v2705_v16, %v1136_v20  ;;  %v1118_v46 = vmul.f32 %v2105_v8, %v1076_v36  ;;  %v1121_v62 = vmul.f32 %v2107_v51, %v1082_v42  ;;  %v1159_v50 = vadd.f32 %v2705_v16, %v1139_v35 }
 0x21d   : > { %v1170_v47 = vpack.c.bf16 %v1156_v43, %v1155_v52  ;;  %v1138_v30 = vmul.f32 %v2595_v54, %v1118_v46  ;;  %v1141_v23 = vmul.f32 %v2595_v54, %v1121_v62 }
 0x21e   : > { %v1080_v34 = vpop.permute.xlu0 %1079 }
 0x21f   : > { %v1158_v11 = vadd.f32 %v2705_v16, %v1138_v30  ;;  %v1120_v59 = vmul.f32 %v2109_v55, %v1080_v34  ;;  %2007 = vmatmul.mubr.msk.bf16.gmra.mxu1 %vm1189_vm3, %v1170_v47  ;;  %v1086_v63 = vpop.permute.xlu1 %1085  ;;  %v1161_v8 = vadd.f32 %v2705_v16, %v1141_v23  ;;  %v2119_v47 = vpop.eup %2118 }
 0x220   : > { %1266 = vmatprep.mubr.bf16.mxu1 %v2229_v3  ;;  %v1123_v38 = vmul.f32 %v2111_v2, %v1086_v63  ;;  %v2121_v30 = vpop.eup %2120 }
 0x221   : > { %v1171_v27 = vpack.c.bf16 %v1158_v11, %v1157_v19  ;;  %v1140_v48 = vmul.f32 %v2595_v54, %v1120_v59  ;;  %v2123_v2 = vpop.eup %2122 }
 0x222   : > { %v1084_v4 = vpop.permute.xlu0 %1083  ;;  %v1143_v60 = vmul.f32 %v2595_v54, %v1123_v38 }
 0x223   : > { %v1160_v15 = vadd.f32 %v2705_v16, %v1140_v48  ;;  %v1122_v0 = vmul.f32 %v2113_v58, %v1084_v4  ;;  %v1090_v52 = vpop.permute.xlu1 %1089 }
 0x224   : > { %v1125_v7 = vmul.f32 %v2117_v21, %v1090_v52  ;;  %v1163_v5 = vadd.f32 %v2705_v16, %v1143_v60 }
 0x225   : > { %v1172_v12 = vpack.c.bf16 %v1160_v15, %v1159_v50  ;;  %v1142_v20 = vmul.f32 %v2595_v54, %v1122_v0 }
 0x226   : > { %v1088_v36 = vpop.permute.xlu0 %1087  ;;  %v1145_v55 = vmul.f32 %v2595_v54, %v1125_v7 }
 0x227   : > { %v1162_v56 = vadd.f32 %v2705_v16, %v1142_v20  ;;  %v1124_v43 = vmul.f32 %v2115_v29, %v1088_v36  ;;  %2008 = vmatmul.mubr.msk.bf16.gmra.mxu1 %vm1189_vm3, %v1171_v27  ;;  %v1094_v62 = vpop.permute.xlu1 %1093 }
 0x228   : > { %1276 = vmatprep.mubr.bf16.mxu1 %v2229_v3  ;;  %v1127_v19 = vmul.f32 %v2121_v30, %v1094_v62  ;;  %v1165_v48 = vadd.f32 %v2705_v16, %v1145_v55 }
 0x229   : > { %v1173_v46 = vpack.c.bf16 %v1162_v56, %v1161_v8  ;;  %v1144_v51 = vmul.f32 %v2595_v54, %v1124_v43 }
 0x22a   : > { %v1092_v42 = vpop.permute.xlu0 %1091  ;;  %v1147_v58 = vmul.f32 %v2595_v54, %v1127_v19 }
 0x22b   : > { %v1164_v34 = vadd.f32 %v2705_v16, %v1144_v51  ;;  %v1126_v35 = vmul.f32 %v2119_v47, %v1092_v42 }
 0x22c   : > { %v1167_v38 = vadd.f32 %v2705_v16, %v1147_v58 }
 0x22d   : > { %v1174_v11 = vpack.c.bf16 %v1164_v34, %v1163_v5  ;;  %v1146_v59 = vmul.f32 %v2595_v54, %v1126_v35 }
 0x22e   : > { %v1096_v27 = vpop.permute.xlu0 %1095 }
 0x22f   : > { %v1166_v23 = vadd.f32 %v2705_v16, %v1146_v59  ;;  %v1128_v63 = vmul.f32 %v2123_v2, %v1096_v27  ;;  %2009 = vmatmul.mubr.msk.bf16.gmra.mxu1 %vm1189_vm3, %v1172_v12 }
 0x230   : > { %1286 = vmatprep.mubr.bf16.mxu1 %v2229_v3 }
 0x231   : > { %v1175_v4 = vpack.c.bf16 %v1166_v23, %v1165_v48  ;;  %v1148_v50 = vmul.f32 %v2595_v54, %v1128_v63 }
 0x233   : > { %v1168_v15 = vadd.f32 %v2705_v16, %v1148_v50 }
 0x235   : > { %v1176_v0 = vpack.c.bf16 %v1168_v15, %v1167_v38 }
 0x237   : > { %2010 = vmatmul.mubr.msk.bf16.gmra.mxu1 %vm1189_vm3, %v1173_v46 }
 0x238   : > { %1296 = vmatprep.mubr.bf16.mxu1 %v2229_v3 }
 0x23f   : > { %2011 = vmatmul.mubr.msk.bf16.gmra.mxu1 %vm1189_vm3, %v1174_v11 }
 0x240   : > { %1306 = vmatprep.mubr.bf16.mxu1 %v2229_v3 }
 0x247   : > { %2012 = vmatmul.mubr.msk.bf16.gmra.mxu1 %vm1189_vm3, %v1175_v4 }
 0x248   : > { %1316 = vmatprep.mubr.bf16.mxu1 %v2229_v3 }
 0x24f   : > { %2013 = vmatmul.mubr.msk.bf16.gmra.mxu1 %vm1189_vm3, %v1176_v0 }
 0x2d7   : > { %v2752_v54 = vpop.f32.mrf.mxu1 }
 0x2d8   : > { %1456 = vrot.lane.b32.xlu1 %v2752_v54, %s2230_s24  ;;  %v3268_v12 = vrot.slane %v2752_v54, 4 }
 0x2d9   : > { %v2756_v16 = vpop.f32.mrf.mxu1 }
 0x2da   : > { %3284 = vst [vmem:[#allocation7_spill] sm:$0xff] %v2756_v16 }
 0x2db   : > { %v1252_v29 = vpop.f32.mrf.mxu1 }
 0x2dc   : > { %v1328_v20 = vrot.slane %v1252_v29, 4  ;;  %1458 = vrot.lane.b32.xlu0 %v1252_v29, %s2230_s24 }
 0x2dd   : > { %v2761_v21 = vpop.f32.mrf.mxu1 }
 0x2de   : > { %v2767_v3 = vsel %vm1343_vm9, %v3268_v12, %v1328_v20 }
 0x2df   : > { %v1258_v8 = vpop.f32.mrf.mxu1 }
 0x2e0   : > { %v1329_v52 = vrot.slane %v1258_v8, 4  ;;  %1460 = vrot.lane.b32.xlu1 %v1258_v8, %s2230_s24 }
 0x2e1   : > { %v2770_v36 = vpop.f32.mrf.mxu1 }
 0x2e2   : > { %v2774_v60 = vsel %vm1343_vm9, %v1328_v20, %v1329_v52 }
 0x2e3   : > { %v1262_v7 = vpop.f32.mrf.mxu1 }
 0x2e4   : > { %v1330_v56 = vrot.slane %v1262_v7, 4  ;;  %1462 = vrot.lane.b32.xlu0 %v1262_v7, %s2230_s24 }
 0x2e5   : > { %v2777_v43 = vpop.f32.mrf.mxu1 }
 0x2e6   : > { %v2781_v46 = vsel %vm1343_vm9, %v1329_v52, %v1330_v56 }
 0x2e7   : > { %v1268_v51 = vpop.f32.mrf.mxu1 }
 0x2e8   : > { %v1331_v47 = vrot.slane %v1268_v51, 4  ;;  %1464 = vrot.lane.b32.xlu1 %v1268_v51, %s2230_s24 }
 0x2e9   : > { %v2784_v42 = vpop.f32.mrf.mxu1 }
 0x2ea   : > { %v2788_v30 = vsel %vm1343_vm9, %v1330_v56, %v1331_v47 }
 0x2eb   : > { %v1272_v5 = vpop.f32.mrf.mxu1 }
 0x2ec   : > { %v1332_v55 = vrot.slane %v1272_v5, 4  ;;  %1466 = vrot.lane.b32.xlu0 %v1272_v5, %s2230_s24 }
 0x2ed   : > { %v2791_v62 = vpop.f32.mrf.mxu1 }
 0x2ee   : > { %v2795_v34 = vsel %vm1343_vm9, %v1331_v47, %v1332_v55 }
 0x2ef   : > { %v1278_v35 = vpop.f32.mrf.mxu1 }
 0x2f0   : > { %v1333_v19 = vrot.slane %v1278_v35, 4  ;;  %1468 = vrot.lane.b32.xlu1 %v1278_v35, %s2230_s24 }
 0x2f1   : > { %v2798_v11 = vpop.f32.mrf.mxu1 }
 0x2f2   : > { %v2802_v59 = vsel %vm1343_vm9, %v1332_v55, %v1333_v19 }
 0x2f3   : > { %v1282_v2 = vpop.f32.mrf.mxu1 }
 0x2f4   : > { %v1334_v27 = vrot.slane %v1282_v2, 4  ;;  %1470 = vrot.lane.b32.xlu0 %v1282_v2, %s2230_s24 }
 0x2f5   : > { %v2805_v48 = vpop.f32.mrf.mxu1 }
 0x2f6   : > { %v2809_v58 = vsel %vm1343_vm9, %v1333_v19, %v1334_v27 }
 0x2f7   : > { %v1288_v23 = vpop.f32.mrf.mxu1 }
 0x2f8   : > { %v1335_v63 = vrot.slane %v1288_v23, 4  ;;  %1472 = vrot.lane.b32.xlu1 %v1288_v23, %s2230_s24 }
 0x2f9   : > { %v2812_v4 = vpop.f32.mrf.mxu1 }
 0x2fa   : > { %v2816_v50 = vsel %vm1343_vm9, %v1334_v27, %v1335_v63 }
 0x2fb   : > { %v1292_v38 = vpop.f32.mrf.mxu1 }
 0x2fc   : > { %v1336_v15 = vrot.slane %v1292_v38, 4  ;;  %1474 = vrot.lane.b32.xlu0 %v1292_v38, %s2230_s24 }
 0x2fd   : > { %v2819_v0 = vpop.f32.mrf.mxu1 }
 0x2fe   : > { %v2823_v29 = vsel %vm1343_vm9, %v1335_v63, %v1336_v15  ;;  %v915_v63 = vsub.s32 1, %v2313_v32 }
 0x2ff   : > { %v1298_v20 = vpop.f32.mrf.mxu1 }
 0x300   : > { %v1337_v8 = vrot.slane %v1298_v20, 4  ;;  %1476 = vrot.lane.b32.xlu1 %v1298_v20, %s2230_s24 }
 0x301   : > { %v2826_v52 = vpop.f32.mrf.mxu1 }
 0x302   : > { %v2830_v7 = vsel %vm1343_vm9, %v1336_v15, %v1337_v8 }
 0x303   : > { %v1302_v56 = vpop.f32.mrf.mxu1 }
 0x304   : > { %v1338_v51 = vrot.slane %v1302_v56, 4  ;;  %1478 = vrot.lane.b32.xlu0 %v1302_v56, %s2230_s24  ;;  %v916_v56 = vrot.slane %v2438_v44, %v915_v63 }
 0x305   : > { %v2833_v47 = vpop.f32.mrf.mxu1 }
 0x306   : > { %3285 = vst [vmem:[#allocation8_spill] sm:$0xff] %v2833_v47  ;;  %v2837_v5 = vsel %vm1343_vm9, %v1337_v8, %v1338_v51 }
 0x307   : > { %v1308_v55 = vpop.f32.mrf.mxu1 }
 0x308   : > { %v1339_v35 = vrot.slane %v1308_v55, 4  ;;  %1480 = vrot.lane.b32.xlu1 %v1308_v55, %s2230_s24  ;;  %v1798_v55 = vsub.s32 4, %v2313_v32 }
 0x309   : > { %v2840_v19 = vpop.f32.mrf.mxu1 }
 0x30a   : > { %3286 = vst [vmem:[#allocation9_spill] sm:$0xff] %v2840_v19  ;;  %v2844_v2 = vsel %vm1343_vm9, %v1338_v51, %v1339_v35 }
 0x30b   : > { %v1312_v27 = vpop.f32.mrf.mxu1 }
 0x30c   : > { %v1340_v23 = vrot.slane %v1312_v27, 4  ;;  %1482 = vrot.lane.b32.xlu0 %v1312_v27, %s2230_s24 }
 0x30d   : > { %v2848_v38 = vpop.f32.mrf.mxu1 }
 0x30e   : > { %3287 = vst [vmem:[#allocation10_spill] sm:$0xff] %v2848_v38  ;;  %v2852_v15 = vsel %vm1343_vm9, %v1339_v35, %v1340_v23  ;;  %v2866_v35 = vrot.slane %v2438_v44, %v1798_v55 }
 0x30f   : > { %3288 = vst [vmem:[#allocation11_spill] sm:$0xff] %v2852_v15  ;;  %v1318_v20 = vpop.f32.mrf.mxu1 }
 0x310   : > { %v1341_v8 = vrot.slane %v1318_v20, 4  ;;  %1484 = vrot.lane.b32.xlu1 %v1318_v20, %s2230_s24  ;;  %3290 = vst [vmem:[#allocation13_spill] sm:$0xff] %v2866_v35  ;;  %v3292_v20 = vrot.slane %v2752_v54, 4 }
 0x311   : > { %v2856_v51 = vpop.f32.mrf.mxu1 }
 0x312   : > { %3289 = vst [vmem:[#allocation12_spill] sm:$0xff] %v2856_v51  ;;  %v2861_v27 = vsel %vm1343_vm9, %v1340_v23, %v1341_v8 }
 0x313   : > { %v1322_v12 = vpop.f32.mrf.mxu1 }
 0x314   : > { %v1342_v31 = vrot.slane %v1322_v12, 4  ;;  %918 = vrot.lane.b32.xlu1 %v916_v56, %s2230_s24  ;;  %1486 = vrot.lane.b32.xlu0 %v1322_v12, %s2230_s24 }
 0x316   : > { %v2870_v63 = vsel %vm1343_vm9, %v1341_v8, %v1342_v31  ;;  %v2876_v26 = vsel %vm1343_vm9, %v1342_v31, %v3292_v20 }
 0x317   : > { %3291 = vst [vmem:[#allocation14_spill] sm:$0xff] %v2870_v63  ;;  %3293 = vst [vmem:[#allocation15_spill] sm:$0xff] %v2876_v26 }
 0x318   : > { %1817 = vrot.lane.b32.xlu0 %v2866_v35, %s2231_s27 }
 0x34a   : > { %v2880_v23 = vpop.permute.xlu1 %1456 }
 0x34b   : > { %3294 = vst [vmem:[#allocation16_spill] sm:$0xff] %v2880_v23  ;;  %v3276_v20 = vrot.slane %v2880_v23, 6 }
 0x34e   : > { %v1459_v8 = vpop.permute.xlu0 %1458 }
 0x34f   : > { %v1505_v16 = vrot.slane %v1459_v8, 6 }
 0x351   : > { %v1534_v26 = vsel %vm603_vm2, %v3276_v20, %v1505_v16  ;;  %v1410_v20 = vsel %vm1362_vm11, %v2774_v60, 0.0 }
 0x352   : > { %v1461_v56 = vpop.permute.xlu1 %1460  ;;  %v1553_v15 = vadd.f32 %v1534_v26, %v2767_v3 }
 0x353   : > { %v1506_v18 = vrot.slane %v1461_v56, 6 }
 0x355   : > { %v1533_v35 = vsel %vm603_vm2, %v1505_v16, %v1506_v18 }
 0x356   : > { %v1463_v31 = vpop.permute.xlu0 %1462  ;;  %v1538_v8 = vsel %vm622_vm4, %v1533_v35, 0.0  ;;  %vm1366_vm4 = vcmp.ge.s32.totalorder %v2477_v24, 4 }
 0x357   : > { %v1507_v63 = vrot.slane %v1463_v31, 6  ;;  %v1586_v31 = vsub.s32 3, %v2313_v32  ;;  %v1554_v35 = vadd.f32 %v1538_v8, %v1410_v20  ;;  %v3302_v32 = vld [vmem:[#allocation10_spill] sm:$0xff] }
 0x359   : > { %v1532_v47 = vsel %vm603_vm2, %v1506_v18, %v1507_v63  ;;  %v1570_v8 = vadd.f32 %v1554_v35, %v2770_v36 }
 0x35a   : > { %v1465_v12 = vpop.permute.xlu1 %1464  ;;  %v1555_v3 = vadd.f32 %v1532_v47, %v2781_v46 }
 0x35b   : > { %v1508_v51 = vrot.slane %v1465_v12, 6 }
 0x35d   : > { %v1531_v12 = vsel %vm603_vm2, %v1507_v63, %v1508_v51  ;;  %v1569_v63 = vadd.f32 %v1553_v15, %v2761_v21  ;;  %v1414_v21 = vsel %vm1366_vm4, %v2802_v59, 0.0  ;;  %v1571_v15 = vadd.f32 %v1555_v3, %v2777_v43 }
 0x35e   : > { %v1467_v19 = vpop.permute.xlu0 %1466  ;;  %v1540_v13 = vsel %vm624_vm8, %v1531_v12, 0.0  ;;  %vm1368_vm8 = vcmp.ge.s32.totalorder %v2504_v25, 4 }
 0x35f   : > { %v1509_v23 = vrot.slane %v1467_v19, 6  ;;  %v2929_v19 = vrot.slane %v2220_v17, %v1586_v31 }
 0x361   : > { %v2955_v24 = vadd.f32 %v2929_v19, %v1569_v63 }
 0x362   : > { %v2882_v22 = vpop.permute.xlu1 %1468 }
 0x363   : > { %v1510_v56 = vrot.slane %v2882_v22, 6  ;;  %2124 = vtanh.f32 %v2955_v24 }
 0x365   : > { %v1529_v26 = vsel %vm603_vm2, %v1509_v23, %v1510_v56 }
 0x366   : > { %v1471_v22 = vpop.permute.xlu0 %1470  ;;  %v1542_v47 = vsel %vm626_vm10, %v1529_v26, 0.0  ;;  %vm1370_vm10 = vcmp.ge.s32.totalorder %v2506_v28, 4 }
 0x367   : > { %v1418_v3 = vsel %vm1370_vm10, %v2830_v7, 0.0 }
 0x36a   : > { %v2884_v44 = vpop.permute.xlu1 %1472 }
 0x36b   : > { %v1512_v60 = vrot.slane %v2884_v44, 6  ;;  %v1511_v44 = vrot.slane %v1471_v22, 6 }
 0x36d   : > { %v1528_v43 = vsel %vm603_vm2, %v1510_v56, %v1511_v44 }
 0x36e   : > { %v1475_v20 = vpop.permute.xlu0 %1474  ;;  %v1559_v25 = vadd.f32 %v1528_v43, %v2809_v58 }
 0x36f   : > { %v1513_v31 = vrot.slane %v1475_v20, 6  ;;  %v1420_v20 = vsel %vm1372_vm0, %v2844_v2, 0.0 }
 0x370   : > { %v1575_v17 = vadd.f32 %v1559_v25, %v2805_v48  ;;  %v2125_v43 = vpop.eup %2124  ;;  %v3301_v25 = vld [vmem:[#allocation15_spill] sm:$0xff] }
 0x372   : > { %v2886_v55 = vpop.permute.xlu1 %1476 }
 0x37a   : > { %v2888_v54 = vpop.permute.xlu1 %1480 }
 0x382   : > { %v2893_v38 = vpop.permute.xlu1 %1484 }
 0x383   : > { %v1518_v7 = vrot.slane %v2893_v38, 6 }
 0x386   : > { %v2909_v16 = vpop.permute.xlu1 %918 }
 0x387   : > { %v921_v40 = vadd.f32 %v2909_v16, %v2317_v33  ;;  %v922_v18 = vadd.f32 %v2909_v16, %v2322_v37  ;;  %v1412_v33 = vsel %vm1364_vm14, %v2788_v30, 0.0  ;;  %v1530_v37 = vsel %vm603_vm2, %v1508_v51, %v1509_v23 }
 0x388   : > { %v1556_v46 = vadd.f32 %v1540_v13, %v1412_v33  ;;  %v923_v30 = vadd.f32 %v2909_v16, %v2331_v41  ;;  %v924_v12 = vadd.f32 %v2909_v16, %v2337_v45  ;;  %v1557_v13 = vadd.f32 %v1530_v37, %v2795_v34  ;;  %v1479_v34 = vpop.permute.xlu0 %1478 }
 0x389   : > { %1852 = vrot.lane.b32.xlu1 %v921_v40, %s2230_s24  ;;  %1854 = vrot.lane.b32.xlu0 %v922_v18, %s2230_s24  ;;  %v1527_v51 = vsel %vm603_vm2, %v1511_v44, %v1512_v60  ;;  %v1558_v41 = vadd.f32 %v1542_v47, %v1414_v21  ;;  %v1514_v45 = vrot.slane %v2886_v55, 6  ;;  %v925_v59 = vadd.f32 %v2909_v16, %v2344_v49 }
 0x38a   : > { %v1572_v36 = vadd.f32 %v1556_v46, %v2784_v42  ;;  %v2963_v23 = vadd.f32 %v2929_v19, %v1570_v8  ;;  %v1544_v55 = vsel %vm628_vm12, %v1527_v51, 0.0  ;;  %v926_v22 = vadd.f32 %v2909_v16, %v2350_v53 }
 0x38b   : > { %v1416_v40 = vsel %vm1368_vm8, %v2816_v50, 0.0  ;;  %v2972_v42 = vadd.f32 %v2929_v19, %v1571_v15  ;;  %v1573_v56 = vadd.f32 %v1557_v13, %v2791_v62  ;;  %v1574_v49 = vadd.f32 %v1558_v41, %v2798_v11 }
 0x38c   : > { %v1525_v35 = vsel %vm603_vm2, %v1513_v31, %v1514_v45  ;;  %v1516_v53 = vrot.slane %v2888_v54, 6  ;;  %v2984_v50 = vadd.f32 %v2929_v19, %v1572_v36  ;;  %v1560_v26 = vadd.f32 %v1544_v55, %v1416_v40  ;;  %v1483_v62 = vpop.permute.xlu0 %1482 }
 0x38d   : > { %1856 = vrot.lane.b32.xlu1 %v923_v30, %s2230_s24  ;;  %1858 = vrot.lane.b32.xlu0 %v924_v12, %s2230_s24  ;;  %v927_v18 = vadd.f32 %v2909_v16, %v2357_v57  ;;  %2126 = vtanh.f32 %v2963_v23  ;;  %v1526_v11 = vsel %vm603_vm2, %v1512_v60, %v1513_v31  ;;  %v1515_v58 = vrot.slane %v1479_v34, 6 }
 0x38e   : > { %v928_v54 = vadd.f32 %v2909_v16, %v2363_v61  ;;  %2128 = vtanh.f32 %v2972_v42  ;;  %v2998_v33 = vadd.f32 %v2929_v19, %v1573_v56  ;;  %v1546_v57 = vsel %vm630_vm13, %v1525_v35, 0.0 }
 0x38f   : > { %v3004_v60 = vadd.f32 %v2929_v19, %v1574_v49  ;;  %v1523_v61 = vsel %vm603_vm2, %v1515_v58, %v1516_v53  ;;  %2130 = vtanh.f32 %v2984_v50  ;;  %v1576_v63 = vadd.f32 %v1560_v26, %v2812_v4 }
 0x390   : > { %v1561_v28 = vadd.f32 %v1526_v11, %v2823_v29  ;;  %v1487_v37 = vpop.permute.xlu0 %1486  ;;  %v929_v46 = vadd.f32 %v2909_v16, %v2370_v1  ;;  %v1562_v47 = vadd.f32 %v1546_v57, %v1418_v3  ;;  %v1524_v48 = vsel %vm603_vm2, %v1514_v45, %v1515_v58  ;;  %v3298_v45 = vld [vmem:[#allocation8_spill] sm:$0xff] }
 0x391   : > { %1860 = vrot.lane.b32.xlu1 %v925_v59, %s2230_s24  ;;  %1862 = vrot.lane.b32.xlu0 %v926_v22, %s2230_s24  ;;  %v1517_v44 = vrot.slane %v1483_v62, 6  ;;  %v930_v38 = vadd.f32 %v2909_v16, %v2376_v6  ;;  %vm1374_vm12 = vcmp.ge.s32.totalorder %v2582_v9, 4  ;;  %2132 = vtanh.f32 %v2998_v33  ;;  %v3299_v9 = vld [vmem:[#allocation11_spill] sm:$0xff]  ;;  %v3300_v59 = vld [vmem:[#allocation9_spill] sm:$0xff]  ;;  %v3303_v62 = vld [vmem:[#allocation14_spill] sm:$0xff] }
 0x392   : > { %v1548_v4 = vsel %vm632_vm15, %v1523_v61, 0.0  ;;  %2134 = vtanh.f32 %v3004_v60  ;;  %v3030_v1 = vadd.f32 %v2929_v19, %v1575_v17  ;;  %v1519_v29 = vrot.slane %v1487_v37, 6  ;;  %v1324_v61 = vpop.f32.mrf.mxu1 }
 0x393   : > { %v1521_v6 = vsel %vm603_vm2, %v1517_v44, %v1518_v7  ;;  %v3036_v2 = vadd.f32 %v2929_v19, %v1576_v63  ;;  %v1577_v30 = vadd.f32 %v1561_v28, %v2819_v0  ;;  %v1563_v39 = vadd.f32 %v1524_v48, %v2837_v5  ;;  %v3295_v5 = vld [vmem:[#allocation5_spill] sm:$0xff] }
 0x394   : > { %v931_v8 = vadd.f32 %v2909_v16, %v2383_v10  ;;  %v1578_v12 = vadd.f32 %v1562_v47, %v2826_v52  ;;  %v1564_v21 = vadd.f32 %v1548_v4, %v1420_v20  ;;  %v1522_v15 = vsel %vm603_vm2, %v1516_v53, %v1517_v44  ;;  %v3296_v10 = vld [vmem:[#allocation16_spill] sm:$0xff] }
 0x395   : > { %1864 = vrot.lane.b32.xlu1 %v927_v18, %s2230_s24  ;;  %1866 = vrot.lane.b32.xlu0 %v928_v54, %s2230_s24  ;;  %v932_v13 = vadd.f32 %v2909_v16, %v2389_v14  ;;  %v1550_v51 = vsel %vm634_vm5, %v1521_v6, 0.0  ;;  %v1422_v0 = vsel %vm1374_vm12, %v2861_v27, 0.0  ;;  %vm1360_vm13 = vcmp.ge.s32.totalorder %v3295_v5, 4  ;;  %v3304_v54 = vld [vmem:[#allocation12_spill] sm:$0xff] }
 0x396   : > { %2136 = vtanh.f32 %v3030_v1  ;;  %v3297_v52 = vrot.slane %v3296_v10, 6  ;;  %v3062_v14 = vadd.f32 %v2929_v19, %v1577_v30  ;;  %v1579_v36 = vadd.f32 %v1563_v39, %v3298_v45  ;;  %v3309_v10 = vld [vmem:[#allocation6_spill] sm:$0xff] }
 0x397   : > { %2138 = vtanh.f32 %v3036_v2  ;;  %v1565_v27 = vadd.f32 %v1522_v15, %v3299_v9  ;;  %v3067_v34 = vadd.f32 %v2929_v19, %v1578_v12  ;;  %v1580_v55 = vadd.f32 %v1564_v21, %v3300_v59  ;;  %v3306_v21 = vld [vmem:[#allocation2_spill] sm:$0xff] }
 0x398   : > { %v1535_v41 = vsel %vm603_vm2, %v1519_v29, %v3297_v52  ;;  %v1566_v31 = vadd.f32 %v1550_v51, %v1422_v0  ;;  %v1520_v22 = vsel %vm603_vm2, %v1518_v7, %v1519_v29  ;;  %v1408_v35 = vsel %vm1360_vm13, %v3301_v25, 0.0  ;;  %v3308_v0 = vld [vmem:[#allocation4_spill] sm:$0xff] }
 0x399   : > { %1868 = vrot.lane.b32.xlu1 %v929_v46, %s2230_s24  ;;  %1870 = vrot.lane.b32.xlu0 %v930_v38, %s2230_s24  ;;  %v1536_v56 = vsel %vm620_vm6, %v1535_v41, 0.0  ;;  %2140 = vtanh.f32 %v3062_v14  ;;  %v3081_v53 = vadd.f32 %v2929_v19, %v1579_v36  ;;  %v1581_v26 = vadd.f32 %v1565_v27, %v3302_v32  ;;  %v3305_v46 = vld [vmem:[#allocation7_spill] sm:$0xff] }
 0x39a   : > { %v2127_v40 = vpop.eup %2126  ;;  %v1567_v18 = vadd.f32 %v1520_v22, %v3303_v62  ;;  %2142 = vtanh.f32 %v3067_v34  ;;  %v3087_v58 = vadd.f32 %v2929_v19, %v1580_v55  ;;  %v1582_v3 = vadd.f32 %v1566_v31, %v3304_v54 }
 0x39b   : > { %v2129_v49 = vpop.eup %2128  ;;  %v1552_v57 = vadd.f32 %v1536_v56, %v1408_v35  ;;  %2144 = vtanh.f32 %v3081_v53  ;;  %v3094_v63 = vadd.f32 %v2929_v19, %v1581_v26  ;;  %v933_v15 = vadd.f32 %v2909_v16, %v3306_v21 }
 0x39c   : > { %v2131_v11 = vpop.eup %2130  ;;  %v1583_v28 = vadd.f32 %v1567_v18, %v1324_v61  ;;  %2146 = vtanh.f32 %v3087_v58  ;;  %v3098_v37 = vadd.f32 %v2929_v19, %v1582_v3  ;;  %v935_v5 = vadd.f32 %v2909_v16, %v3308_v0 }
 0x39d   : > { %1872 = vrot.lane.b32.xlu1 %v931_v8, %s2230_s24  ;;  %1874 = vrot.lane.b32.xlu0 %v932_v13, %s2230_s24  ;;  %v1568_v47 = vadd.f32 %v1552_v57, %v3305_v46  ;;  %2148 = vtanh.f32 %v3094_v63  ;;  %v3307_v13 = vld [vmem:[#allocation3_spill] sm:$0xff]  ;;  %v936_v52 = vadd.f32 %v2909_v16, %v3309_v10  ;;  %v1605_v41 = vsub.f32 0.0, %v2955_v24 }
 0x39e   : > { %v2133_v17 = vpop.eup %2132  ;;  %v3105_v44 = vadd.f32 %v2929_v19, %v1583_v28  ;;  %2150 = vtanh.f32 %v3098_v37  ;;  %v934_v51 = vadd.f32 %v2909_v16, %v3307_v13  ;;  %v1606_v45 = vsub.f32 0.0, %v2963_v23 }
 0x39f   : > { %v2135_v7 = vpop.eup %2134  ;;  %v3109_v20 = vadd.f32 %v2929_v19, %v1568_v47  ;;  %v1607_v36 = vsub.f32 0.0, %v2972_v42  ;;  %v1622_v9 = vmul.f32 1.442695, %v1605_v41  ;;  %v1609_v55 = vsub.f32 0.0, %v2998_v33 }
 0x3a0   : > { %2152 = vtanh.f32 %v3105_v44  ;;  %v1624_v27 = vmul.f32 1.442695, %v1606_v45  ;;  %v1610_v31 = vsub.f32 0.0, %v3004_v60  ;;  %v1611_v23 = vsub.f32 0.0, %v3030_v1 }
 0x3a1   : > { %1734 = vrot.lane.b32.xlu1 %v2125_v43, %s2231_s27  ;;  %1736 = vrot.lane.b32.xlu0 %v2127_v40, %s2231_s27  ;;  %2154 = vtanh.f32 %v3109_v20  ;;  %v1608_v43 = vsub.f32 0.0, %v2984_v50  ;;  %v1626_v59 = vmul.f32 1.442695, %v1607_v36  ;;  %v1630_v22 = vmul.f32 1.442695, %v1609_v55  ;;  %v3142_v40 = vpop.permute.xlu0 %1817 }
 0x3a2   : > { %2156 = vpow2.f32 %v1622_v9  ;;  %v1632_v24 = vmul.f32 1.442695, %v1610_v31  ;;  %v1612_v42 = vsub.f32 0.0, %v3036_v2  ;;  %v1634_v50 = vmul.f32 1.442695, %v1611_v23 }
 0x3a3   : > { %v2137_v48 = vpop.eup %2136  ;;  %2158 = vpow2.f32 %v1624_v27  ;;  %v1628_v16 = vmul.f32 1.442695, %v1608_v43  ;;  %v1613_v33 = vsub.f32 0.0, %v3062_v14  ;;  %v1615_v26 = vsub.f32 0.0, %v3081_v53 }
 0x3a4   : > { %v2139_v38 = vpop.eup %2138  ;;  %2160 = vpow2.f32 %v1626_v59  ;;  %v1636_v56 = vmul.f32 1.442695, %v1612_v42  ;;  %v1616_v14 = vsub.f32 0.0, %v3087_v58  ;;  %v1618_v46 = vsub.f32 0.0, %v3098_v37 }
 0x3a5   : > { %1738 = vrot.lane.b32.xlu1 %v2129_v49, %s2231_s27  ;;  %1740 = vrot.lane.b32.xlu0 %v2131_v11, %s2231_s27  ;;  %2162 = vpow2.f32 %v1628_v16  ;;  %v1614_v49 = vsub.f32 0.0, %v3067_v34  ;;  %v1638_v1 = vmul.f32 1.442695, %v1613_v33  ;;  %v1642_v57 = vmul.f32 1.442695, %v1615_v26 }
 0x3a6   : > { %v2141_v4 = vpop.eup %2140  ;;  %2164 = vpow2.f32 %v1630_v22  ;;  %v1644_v28 = vmul.f32 1.442695, %v1616_v14 }
 0x3a7   : > { %v2143_v6 = vpop.eup %2142  ;;  %2166 = vpow2.f32 %v1632_v24  ;;  %v1640_v62 = vmul.f32 1.442695, %v1614_v49  ;;  %v3310_v24 = vld [vmem:[#allocation13_spill] sm:$0xff] }
 0x3a8   : > { %v2145_v29 = vpop.eup %2144  ;;  %2168 = vpow2.f32 %v1634_v50 }
 0x3a9   : > { %1742 = vrot.lane.b32.xlu1 %v2133_v17, %s2231_s27  ;;  %1744 = vrot.lane.b32.xlu0 %v2135_v7, %s2231_s27  ;;  %v2147_v30 = vpop.eup %2146  ;;  %2170 = vpow2.f32 %v1636_v56  ;;  %v1617_v17 = vsub.f32 0.0, %v3094_v63  ;;  %v1604_v63 = vsub.f32 0.0, %v3109_v20 }
 0x3aa   : > { %v2149_v19 = vpop.eup %2148  ;;  %2172 = vpow2.f32 %v1638_v1 }
 0x3ab   : > { %v2151_v39 = vpop.eup %2150  ;;  %2174 = vpow2.f32 %v1640_v62 }
 0x3ad   : > { %1746 = vrot.lane.b32.xlu1 %v2137_v48, %s2231_s27  ;;  %1748 = vrot.lane.b32.xlu0 %v2139_v38, %s2231_s27  ;;  %v2153_v8 = vpop.eup %2152  ;;  %v1646_v38 = vmul.f32 1.442695, %v1617_v17 }
 0x3ae   : > { %v2155_v12 = vpop.eup %2154 }
 0x3af   : > { %v2157_v35 = vpop.eup %2156 }
 0x3b0   : > { %v2159_v32 = vpop.eup %2158  ;;  %v1653_v34 = vadd.f32 1.0, %v2157_v35 }
 0x3b1   : > { %1750 = vrot.lane.b32.xlu1 %v2141_v4, %s2231_s27  ;;  %1752 = vrot.lane.b32.xlu0 %v2143_v6, %s2231_s27  ;;  %v2161_v18 = vpop.eup %2160  ;;  %v1654_v54 = vadd.f32 1.0, %v2159_v32  ;;  %v1619_v4 = vsub.f32 0.0, %v3105_v44 }
 0x3b2   : > { %v2163_v3 = vpop.eup %2162  ;;  %v1655_v53 = vadd.f32 1.0, %v2161_v18  ;;  %2176 = vrcp.f32 %v1653_v34 }
 0x3b3   : > { %v2165_v7 = vpop.eup %2164  ;;  %2178 = vrcp.f32 %v1654_v54  ;;  %v1656_v58 = vadd.f32 1.0, %v2163_v3 }
 0x3b4   : > { %v2167_v48 = vpop.eup %2166  ;;  %2180 = vpow2.f32 %v1642_v57 }
 0x3b5   : > { %1754 = vrot.lane.b32.xlu1 %v2145_v29, %s2231_s27  ;;  %1756 = vrot.lane.b32.xlu0 %v2147_v30, %s2231_s27  ;;  %2182 = vrcp.f32 %v1655_v53  ;;  %v1657_v29 = vadd.f32 1.0, %v2165_v7  ;;  %v1648_v30 = vmul.f32 1.442695, %v1618_v46  ;;  %v1658_v37 = vadd.f32 1.0, %v2167_v48 }
 0x3b6   : > { %2184 = vpow2.f32 %v1644_v28 }
 0x3b7   : > { %2186 = vrcp.f32 %v1656_v58 }
 0x3b8   : > { %2188 = vpow2.f32 %v1646_v38 }
 0x3b9   : > { %1758 = vrot.lane.b32.xlu1 %v2149_v19, %s2231_s27  ;;  %1760 = vrot.lane.b32.xlu0 %v2151_v39, %s2231_s27  ;;  %v1650_v39 = vmul.f32 1.442695, %v1619_v4  ;;  %2190 = vrcp.f32 %v1657_v29 }
 0x3ba   : > { %2192 = vpow2.f32 %v1648_v30 }
 0x3bb   : > { %2194 = vrcp.f32 %v1658_v37 }
 0x3bc   : > { %2196 = vpow2.f32 %v1650_v39 }
 0x3bd   : > { %1762 = vrot.lane.b32.xlu1 %v2153_v8, %s2231_s27  ;;  %1732 = vrot.lane.b32.xlu0 %v2155_v12, %s2231_s27  ;;  %v2169_v8 = vpop.eup %2168  ;;  %v1620_v12 = vmul.f32 1.442695, %v1604_v63 }
 0x3be   : > { %v2171_v44 = vpop.eup %2170 }
 0x3bf   : > { %v2173_v13 = vpop.eup %2172  ;;  %2198 = vpow2.f32 %v1620_v12  ;;  %v1660_v0 = vadd.f32 1.0, %v2171_v44 }
 0x3c0   : > { %v1661_v45 = vadd.f32 1.0, %v2173_v13 }
 0x3c1   : > { %1876 = vrot.lane.b32.xlu1 %v933_v15, %s2230_s24  ;;  %1878 = vrot.lane.b32.xlu0 %v934_v51, %s2230_s24  ;;  %v1659_v15 = vadd.f32 1.0, %v2169_v8 }
 0x3c3   : > { %2200 = vrcp.f32 %v1659_v15 }
 0x3c4   : > { %2202 = vrcp.f32 %v1660_v0 }
 0x3c5   : > { %1880 = vrot.lane.b32.xlu1 %v935_v5, %s2230_s24  ;;  %1882 = vrot.lane.b32.xlu0 %v936_v52, %s2230_s24  ;;  %v2175_v5 = vpop.eup %2174  ;;  %2204 = vrcp.f32 %v1661_v45 }
 0x3c6   : > { %v2177_v52 = vpop.eup %2176  ;;  %v1662_v27 = vadd.f32 1.0, %v2175_v5 }
 0x3c7   : > { %v2179_v41 = vpop.eup %2178 }
 0x3c8   : > { %v2181_v36 = vpop.eup %2180  ;;  %2206 = vrcp.f32 %v1662_v27 }
 0x3c9   : > { %v2183_v43 = vpop.eup %2182  ;;  %v1663_v42 = vadd.f32 1.0, %v2181_v36 }
 0x3ca   : > { %v2185_v16 = vpop.eup %2184 }
 0x3cb   : > { %v2187_v22 = vpop.eup %2186  ;;  %v1664_v26 = vadd.f32 1.0, %v2185_v16  ;;  %2208 = vrcp.f32 %v1663_v42 }
 0x3cc   : > { %v2189_v50 = vpop.eup %2188 }
 0x3cd   : > { %v2191_v49 = vpop.eup %2190  ;;  %v1665_v57 = vadd.f32 1.0, %v2189_v50  ;;  %2210 = vrcp.f32 %v1664_v26 }
 0x3ce   : > { %v2193_v62 = vpop.eup %2192 }
 0x3cf   : > { %v2195_v34 = vpop.eup %2194  ;;  %2212 = vrcp.f32 %v1665_v57 }
 0x3d0   : > { %v2197_v17 = vpop.eup %2196 }
 0x3d1   : > { %v2199_v46 = vpop.eup %2198  ;;  %v1667_v30 = vadd.f32 1.0, %v2197_v17 }
 0x3d2   : > { %v2201_v37 = vpop.eup %2200  ;;  %v1652_v44 = vadd.f32 1.0, %v2199_v46 }
 0x3d3   : > { %v2203_v15 = vpop.eup %2202 }
 0x3d4   : > { %v2205_v45 = vpop.eup %2204 }
 0x3fb   : > { %v3147_v25 = vpop.permute.xlu1 %1852  ;;  %v3149_v60 = vpop.permute.xlu0 %1854 }
 0x3ff   : > { %v3152_v2 = vpop.permute.xlu1 %1856  ;;  %v3155_v11 = vpop.permute.xlu0 %1858 }
 0x403   : > { %v3158_v61 = vpop.permute.xlu1 %1860  ;;  %v3161_v47 = vpop.permute.xlu0 %1862 }
 0x407   : > { %v3165_v6 = vpop.permute.xlu1 %1864  ;;  %v3167_v19 = vpop.permute.xlu0 %1866 }
 0x40b   : > { %v3169_v21 = vpop.permute.xlu1 %1868  ;;  %v3171_v20 = vpop.permute.xlu0 %1870 }
 0x40f   : > { %v3173_v51 = vpop.permute.xlu1 %1872  ;;  %v3175_v10 = vpop.permute.xlu0 %1874 }
 0x413   : > { %v1735_v9 = vpop.permute.xlu1 %1734  ;;  %v1737_v55 = vpop.permute.xlu0 %1736 }
 0x414   : > { %v1781_v59 = vmul.f32 %v2177_v52, %v1735_v9  ;;  %v1782_v31 = vmul.f32 %v2179_v41, %v1737_v55 }
 0x416   : > { %v1801_v23 = vmul.f32 %v3310_v24, %v1781_v59  ;;  %v1802_v33 = vmul.f32 %v3310_v24, %v1782_v31 }
 0x417   : > { %v1739_v56 = vpop.permute.xlu1 %1738  ;;  %v1741_v1 = vpop.permute.xlu0 %1740 }
 0x418   : > { %v1821_v35 = vadd.f32 %v3142_v40, %v1801_v23  ;;  %v1783_v32 = vmul.f32 %v2183_v43, %v1739_v56  ;;  %v1822_v18 = vadd.f32 %v3142_v40, %v1802_v33  ;;  %v1784_v14 = vmul.f32 %v2187_v22, %v1741_v1  ;;  %v2207_v43 = vpop.eup %2206 }
 0x419   : > { %v2209_v23 = vpop.eup %2208 }
 0x41a   : > { %v1901_v54 = vadd.f32 %v3149_v60, %v1821_v35  ;;  %v1803_v3 = vmul.f32 %v3310_v24, %v1783_v32  ;;  %v1902_v53 = vadd.f32 %v3152_v2, %v1822_v18  ;;  %v1804_v7 = vmul.f32 %v3310_v24, %v1784_v14  ;;  %v2211_v32 = vpop.eup %2210 }
 0x41b   : > { %v1743_v28 = vpop.permute.xlu1 %1742  ;;  %v1745_v38 = vpop.permute.xlu0 %1744  ;;  %v1666_v60 = vadd.f32 1.0, %v2193_v62 }
 0x41c   : > { %1917 = vst.msk [vmem:[%s3185_s25 + $0x8] sm:$0xff] %vm1189_vm3, %v1901_v54  ;;  %v1823_v58 = vadd.f32 %v3142_v40, %v1803_v3  ;;  %v1785_v48 = vmul.f32 %v2191_v49, %v1743_v28  ;;  %1918 = vst.msk [vmem:[%s3185_s25 + $0x10] sm:$0xff] %vm1189_vm3, %v1902_v53  ;;  %v1824_v4 = vadd.f32 %v3142_v40, %v1804_v7  ;;  %v2213_v62 = vpop.eup %2212 }
 0x41d   : > { %v1786_v63 = vmul.f32 %v2195_v34, %v1745_v38  ;;  %2214 = vrcp.f32 %v1666_v60 }
 0x41e   : > { %v1903_v2 = vadd.f32 %v3155_v11, %v1823_v58  ;;  %v1805_v29 = vmul.f32 %v3310_v24, %v1785_v48  ;;  %v1904_v39 = vadd.f32 %v3158_v61, %v1824_v4  ;;  %2216 = vrcp.f32 %v1667_v30 }
 0x41f   : > { %v1806_v8 = vmul.f32 %v3310_v24, %v1786_v63  ;;  %v1747_v12 = vpop.permute.xlu1 %1746  ;;  %v1749_v5 = vpop.permute.xlu0 %1748  ;;  %2218 = vrcp.f32 %v1652_v44 }
 0x420   : > { %1919 = vst.msk [vmem:[%s3185_s25 + $0x18] sm:$0xff] %vm1189_vm3, %v1903_v2  ;;  %v1825_v13 = vadd.f32 %v3142_v40, %v1805_v29  ;;  %v1787_v0 = vmul.f32 %v2201_v37, %v1747_v12  ;;  %1920 = vst.msk [vmem:[%s3185_s25 + $0x20] sm:$0xff] %vm1189_vm3, %v1904_v39  ;;  %v1788_v52 = vmul.f32 %v2203_v15, %v1749_v5 }
 0x421   : > { %v1826_v11 = vadd.f32 %v3142_v40, %v1806_v8 }
 0x422   : > { %v1905_v61 = vadd.f32 %v3161_v47, %v1825_v13  ;;  %v1807_v41 = vmul.f32 %v3310_v24, %v1787_v0  ;;  %v1808_v9 = vmul.f32 %v3310_v24, %v1788_v52 }
 0x423   : > { %v1906_v36 = vadd.f32 %v3165_v6, %v1826_v11  ;;  %v1751_v27 = vpop.permute.xlu1 %1750  ;;  %v1753_v16 = vpop.permute.xlu0 %1752 }
 0x424   : > { %1921 = vst.msk [vmem:[%s3185_s25 + $0x28] sm:$0xff] %vm1189_vm3, %v1905_v61  ;;  %v1827_v59 = vadd.f32 %v3142_v40, %v1807_v41  ;;  %v1789_v55 = vmul.f32 %v2205_v45, %v1751_v27  ;;  %v1828_v47 = vadd.f32 %v3142_v40, %v1808_v9  ;;  %v1790_v31 = vmul.f32 %v2207_v43, %v1753_v16 }
 0x425   : > { %1922 = vst.msk [vmem:[%s3185_s25 + $0x30] sm:$0xff] %vm1189_vm3, %v1906_v36 }
 0x426   : > { %v1907_v6 = vadd.f32 %v3167_v19, %v1827_v59  ;;  %v1809_v22 = vmul.f32 %v3310_v24, %v1789_v55  ;;  %v1908_v42 = vadd.f32 %v3169_v21, %v1828_v47  ;;  %v1810_v50 = vmul.f32 %v3310_v24, %v1790_v31 }
 0x427   : > { %v1755_v33 = vpop.permute.xlu1 %1754  ;;  %v1757_v35 = vpop.permute.xlu0 %1756 }
 0x428   : > { %1923 = vst.msk [vmem:[%s3185_s25 + $0x38] sm:$0xff] %vm1189_vm3, %v1907_v6  ;;  %v1829_v56 = vadd.f32 %v3142_v40, %v1809_v22  ;;  %v1791_v49 = vmul.f32 %v2209_v23, %v1755_v33  ;;  %1924 = vst.msk [vmem:[%s3185_s25 + $0x40] sm:$0xff] %vm1189_vm3, %v1908_v42  ;;  %v1830_v19 = vadd.f32 %v3142_v40, %v1810_v50 }
 0x429   : > { %v1792_v26 = vmul.f32 %v2211_v32, %v1757_v35 }
 0x42a   : > { %v1909_v1 = vadd.f32 %v3171_v20, %v1829_v56  ;;  %v1811_v21 = vmul.f32 %v3310_v24, %v1791_v49  ;;  %v1910_v18 = vadd.f32 %v3173_v51, %v1830_v19  ;;  %v2215_v57 = vpop.eup %2214 }
 0x42b   : > { %v1759_v14 = vpop.permute.xlu1 %1758  ;;  %v1761_v3 = vpop.permute.xlu0 %1760  ;;  %v1812_v20 = vmul.f32 %v3310_v24, %v1792_v26 }
 0x42c   : > { %1925 = vst.msk [vmem:[%s3185_s25 + $0x48] sm:$0xff] %vm1189_vm3, %v1909_v1  ;;  %v1831_v34 = vadd.f32 %v3142_v40, %v1811_v21  ;;  %v1793_v54 = vmul.f32 %v2213_v62, %v1759_v14  ;;  %1926 = vst.msk [vmem:[%s3185_s25 + $0x50] sm:$0xff] %vm1189_vm3, %v1910_v18  ;;  %v1794_v53 = vmul.f32 %v2215_v57, %v1761_v3  ;;  %v2217_v7 = vpop.eup %2216 }
 0x42d   : > { %v2219_v51 = vpop.eup %2218  ;;  %v1832_v4 = vadd.f32 %v3142_v40, %v1812_v20 }
 0x42e   : > { %v1911_v17 = vadd.f32 %v3175_v10, %v1831_v34  ;;  %v1813_v28 = vmul.f32 %v3310_v24, %v1793_v54  ;;  %v1814_v60 = vmul.f32 %v3310_v24, %v1794_v53 }
 0x42f   : > { %v1763_v46 = vpop.permute.xlu1 %1762  ;;  %v1733_v58 = vpop.permute.xlu0 %1732 }
 0x430   : > { %1927 = vst.msk [vmem:[%s3185_s25 + $0x58] sm:$0xff] %vm1189_vm3, %v1911_v17  ;;  %v1795_v48 = vmul.f32 %v2217_v7, %v1763_v46  ;;  %v1780_v38 = vmul.f32 %v2219_v51, %v1733_v58  ;;  %v1833_v2 = vadd.f32 %v3142_v40, %v1813_v28  ;;  %v1834_v12 = vadd.f32 %v3142_v40, %v1814_v60 }
 0x432   : > { %v1800_v10 = vmul.f32 %v3310_v24, %v1780_v38  ;;  %v1815_v63 = vmul.f32 %v3310_v24, %v1795_v48 }
 0x433   : > { %v1877_v29 = vpop.permute.xlu1 %1876  ;;  %v1879_v30 = vpop.permute.xlu0 %1878 }
 0x434   : > { %v1912_v37 = vadd.f32 %v1877_v29, %v1832_v4  ;;  %v1820_v39 = vadd.f32 %v3142_v40, %v1800_v10  ;;  %v1913_v8 = vadd.f32 %v1879_v30, %v1833_v2  ;;  %v1835_v24 = vadd.f32 %v3142_v40, %v1815_v63 }
 0x436   : > { %1928 = vst.msk [vmem:[%s3185_s25 + $0x60] sm:$0xff] %vm1189_vm3, %v1912_v37  ;;  %v1900_v44 = vadd.f32 %v3147_v25, %v1820_v39  ;;  %1929 = vst.msk [vmem:[%s3185_s25 + $0x68] sm:$0xff] %vm1189_vm3, %v1913_v8 }
 0x437   : > { %v1881_v15 = vpop.permute.xlu1 %1880  ;;  %v1883_v13 = vpop.permute.xlu0 %1882 }
 0x438   : > { %v1914_v0 = vadd.f32 %v1881_v15, %v1834_v12  ;;  %1916 = vst.msk [vmem:[%s3185_s25] sm:$0xff] %vm1189_vm3, %v1900_v44  ;;  %v1915_v5 = vadd.f32 %v1883_v13, %v1835_v24 }
 0x43a   : > { %1930 = vst.msk [vmem:[%s3185_s25 + $0x70] sm:$0xff] %vm1189_vm3, %v1914_v0  ;;  %1931 = vst.msk [vmem:[%s3185_s25 + $0x78] sm:$0xff] %vm1189_vm3, %v1915_v5 }
 0x43b PF: > { %s14_s15 = sadd.s32 1, %s2227_s15  }
 0x43c   : > { %p11_p4 = scmp.ge.s32.totalorder %s14_s15, 4  }
 0x43e   :  { %13 = sbr.rel (!%p11_p4) target bundleno = 1 (0x1), region = 66 }

</bundles_post_ra>
